<compile_context>
chip_gen: v6e
topology: v6e:2x2x1
jax: 0.10.0
libtpu: 0.0.40
codegen_flags: <defaults>
</compile_context>

<pallas_src>
import functools

import jax
import jax.numpy as jnp
import numpy as np
from jax.experimental import pallas as pl
from jax.experimental.pallas import tpu as pltpu

GROUPS = 16        # GroupNorm(16, 512)
FEAT_C = 512       # UNet3D dec4 channel count
CLASS_NUM = 4
EPS = 1e-5         # torch.nn.GroupNorm default eps


# -----------------------------------------------------------------------------
# Generation-aware VMEM budgeting.
# -----------------------------------------------------------------------------
def _vmem_limit_bytes():
    """Scoped-VMEM limit: ~3/4 of physical (v5e/v6e 128 MiB -> 96, v7x 64 -> 48)."""
    cap = 64 * 1024 * 1024  # conservative fallback (v7x-sized)
    try:
        cap = int(pltpu.get_tpu_info().vmem_capacity_bytes)
    except Exception:
        pass
    return int(min(cap * 3 // 4, 112 * 1024 * 1024))


def _fused_block_fits(gt, cg, s, itemsize, vmem_limit):
    in_block = gt * cg * s * itemsize      # one input buffer
    f32_tmp = gt * cg * s * 4              # in-kernel f32 upcast of the block
    need = 2 * in_block + f32_tmp + (1 << 20)   # double-buffered input + temp + slack
    return need <= int(vmem_limit * 0.85)


def _pick_s_chunk(S, gt, cg, itemsize, vmem_limit):
    """Pick an S chunk (multiple of 128) for the two-pass fallback path."""
    budget = int(vmem_limit * 0.85)

    def fits(st):
        return (2 * itemsize + 4) * gt * cg * st + (1 << 20) <= budget

    if S % 128 == 0:
        best, st = None, 128
        while st <= S:
            if S % st == 0 and fits(st):
                best = st
            st += 128
        if best is not None:
            return best, S, None                 # (chunk, padded S, mask length)
    # S not 128-aligned (or no fitting divisor): zero-pad and mask in pass 2.
    s_pad = ((S + 127) // 128) * 128
    n128 = s_pad // 128
    best = 128
    for k in range(1, n128 + 1):
        if n128 % k == 0 and fits(128 * k):
            best = 128 * k
    return best, s_pad, S


# -----------------------------------------------------------------------------
# Kernel 1 (main path): fused GroupNorm(16,C) -> ReLU -> global average pool.
# One grid step handles a (batch-item, group-tile) slice; single HBM read of
# the dec4 block, folded per-channel affine, f32 math.
# -----------------------------------------------------------------------------
def _gap_fused_kernel(x_ref, gamma_ref, beta_ref, o_ref):
    # x_ref: (1, Gt, Cg, S) bf16/f32; gamma/beta: (Gt, Cg) f32; o_ref: (1, Gt, Cg) f32
    x = x_ref[0].astype(jnp.float32)                    # (Gt, Cg, S)
    _, cg, s = x.shape
    inv_n = 1.0 / (cg * s)

    s1 = jnp.sum(x, axis=2)                             # (Gt, Cg)   lane reduce (XLU)
    s2 = jnp.sum(x * x, axis=2)                         # (Gt, Cg)
    gsum = jnp.sum(s1, axis=1, keepdims=True)           # (Gt, 1)
    gsq = jnp.sum(s2, axis=1, keepdims=True)            # (Gt, 1)
    mean = gsum * inv_n
    var = jnp.maximum(gsq * inv_n - mean * mean, 0.0)   # clamp: no NaN from cancellation
    inv_std = jax.lax.rsqrt(var + EPS)

    # Folded per-channel affine: y = x*scale + shift, then ReLU, then mean over S.
    scale = gamma_ref[...] * inv_std                    # (Gt, Cg)
    shift = beta_ref[...] - mean * scale                # (Gt, Cg)
    y = jnp.maximum(x * scale[:, :, None] + shift[:, :, None], 0.0)
    o_ref[0] = jnp.sum(y, axis=2) * (1.0 / s)


# -----------------------------------------------------------------------------
# Kernels 1b/1c (fallback path for large S): S-chunked two-pass GroupNorm+GAP.
# Pass A accumulates per-channel sum / sum-of-squares; the tiny mean/var/
# scale/shift math runs in XLA; pass B normalizes, ReLUs and accumulates the
# pooled sum.  Costs 2x HBM reads but never blows VMEM.
# -----------------------------------------------------------------------------
def _stats_kernel(x_ref, s1_ref, s2_ref):
    @pl.when(pl.program_id(1) == 0)
    def _():
        s1_ref[...] = jnp.zeros_like(s1_ref)
        s2_ref[...] = jnp.zeros_like(s2_ref)

    x = x_ref[0].astype(jnp.float32)                    # (G, Cg, St)
    s1_ref[0] += jnp.sum(x, axis=2)
    s2_ref[0] += jnp.sum(x * x, axis=2)


def _norm_pool_kernel(x_ref, scale_ref, shift_ref, o_ref, *, s_chunk, s_true):
    s_idx = pl.program_id(1)

    @pl.when(s_idx == 0)
    def _():
        o_ref[...] = jnp.zeros_like(o_ref)

    x = x_ref[0].astype(jnp.float32)                    # (G, Cg, St)
    y = jnp.maximum(x * scale_ref[0][:, :, None] + shift_ref[0][:, :, None], 0.0)
    if s_true is not None:  # zero-padded tail must not contribute to the pool
        pos = s_idx * s_chunk + jax.lax.broadcasted_iota(jnp.int32, (1, 1, s_chunk), 2)
        y = jnp.where(pos < s_true, y, 0.0)
    o_ref[0] += jnp.sum(y, axis=2)


def _groupnorm_relu_gap_two_pass(x, gamma_r, beta_r, vmem_limit):
    B, C, S = x.shape
    G, Cg = GROUPS, C // GROUPS
    st, s_pad, s_true = _pick_s_chunk(S, G, Cg, x.dtype.itemsize, vmem_limit)
    if s_pad != S:
        x = jnp.pad(x, ((0, 0), (0, 0), (0, s_pad - S)))
    xr = x.reshape(B, G, Cg, s_pad)
    s_steps = s_pad // st
    cp = pltpu.CompilerParams(
        dimension_semantics=("parallel", "arbitrary"),
        vmem_limit_bytes=vmem_limit,
    )

    s1, s2 = pl.pallas_call(
        _stats_kernel,
        out_shape=(jax.ShapeDtypeStruct((B, G, Cg), jnp.float32),
                   jax.ShapeDtypeStruct((B, G, Cg), jnp.float32)),
        grid_spec=pltpu.PrefetchScalarGridSpec(
            num_scalar_prefetch=0,
            grid=(B, s_steps),
            in_specs=[pl.BlockSpec((1, G, Cg, st), lambda b, s: (b, 0, 0, s))],
            out_specs=[pl.BlockSpec((1, G, Cg), lambda b, s: (b, 0, 0)),
                       pl.BlockSpec((1, G, Cg), lambda b, s: (b, 0, 0))],
        ),
        compiler_params=cp,
    )(xr)

    # Tiny (B, G[, Cg]) math in XLA: group stats + folded affine.
    n = Cg * S  # true element count per group (zero padding contributes nothing)
    gsum = jnp.sum(s1, axis=2)
    gsq = jnp.sum(s2, axis=2)
    mean = gsum / n
    var = jnp.maximum(gsq / n - mean * mean, 0.0)
    inv_std = jax.lax.rsqrt(var + EPS)
    scale = gamma_r[None] * inv_std[:, :, None]          # (B, G, Cg)
    shift = beta_r[None] - mean[:, :, None] * scale      # (B, G, Cg)

    kern = functools.partial(_norm_pool_kernel, s_chunk=st, s_true=s_true)
    pooled = pl.pallas_call(
        kern,
        out_shape=jax.ShapeDtypeStruct((B, G, Cg), jnp.float32),
        grid_spec=pltpu.PrefetchScalarGridSpec(
            num_scalar_prefetch=0,
            grid=(B, s_steps),
            in_specs=[pl.BlockSpec((1, G, Cg, st), lambda b, s: (b, 0, 0, s)),
                      pl.BlockSpec((1, G, Cg), lambda b, s: (b, 0, 0)),
                      pl.BlockSpec((1, G, Cg), lambda b, s: (b, 0, 0))],
            out_specs=pl.BlockSpec((1, G, Cg), lambda b, s: (b, 0, 0)),
        ),
        compiler_params=cp,
    )(xr, scale.astype(jnp.float32), shift.astype(jnp.float32))
    return (pooled * (1.0 / S)).reshape(B, C)


def groupnorm_relu_gap(feats, gamma, beta, *, force_two_pass=False):
    """feats: (B, C, S) with S = D*H*W flattened (bf16 preferred). Returns (B, C) f32."""
    B, C, S = feats.shape
    G, Cg = GROUPS, C // GROUPS
    vmem_limit = _vmem_limit_bytes()
    gamma_r = gamma.reshape(G, Cg).astype(jnp.float32)
    beta_r = beta.reshape(G, Cg).astype(jnp.float32)

    gt = None
    if not force_two_pass:
        for cand in (G, 8):   # Gt must be a multiple of 8 (or == G) for (8,128) tiling
            if _fused_block_fits(cand, Cg, S, feats.dtype.itemsize, vmem_limit):
                gt = cand
                break
    if gt is None:
        return _groupnorm_relu_gap_two_pass(feats, gamma_r, beta_r, vmem_limit)

    x = feats.reshape(B, G, Cg, S)
    g_steps = G // gt
    # Output last dim is Cg=32 (< 128 lanes): masked stores, but the output is
    # ~2 KiB/step vs MiB-scale reads -> negligible.
    out = pl.pallas_call(
        _gap_fused_kernel,
        out_shape=jax.ShapeDtypeStruct((B, G, Cg), jnp.float32),
        grid_spec=pltpu.PrefetchScalarGridSpec(
            num_scalar_prefetch=0,
            grid=(B, g_steps),
            in_specs=[
                pl.BlockSpec((1, gt, Cg, S), lambda b, g: (b, g, 0, 0)),
                pl.BlockSpec((gt, Cg), lambda b, g: (g, 0)),
                pl.BlockSpec((gt, Cg), lambda b, g: (g, 0)),
            ],
            out_specs=pl.BlockSpec((1, gt, Cg), lambda b, g: (b, g, 0)),
        ),
        compiler_params=pltpu.CompilerParams(
            dimension_semantics=("parallel", "parallel"),
            vmem_limit_bytes=vmem_limit,
        ),
    )(x, gamma_r, beta_r)
    return out.reshape(B, C)


# -----------------------------------------------------------------------------
# Kernel 2: classify_conv (1x1x1 Conv3d 2048->512) + classify_head
# (1x1x1 Conv3d 512->class_num) on pooled features == two fused matmuls.
# No grid (no pointless double-buffering); bf16 MXU dots with f32 accumulation.
# -----------------------------------------------------------------------------
def _head_kernel(x_ref, w1_ref, b1_ref, w2_ref, b2_ref, o_ref):
    x = x_ref[...].astype(jnp.bfloat16)                                   # (N, 4C)
    h = jnp.dot(x, w1_ref[...], preferred_element_type=jnp.float32) + b1_ref[...]
    out = jnp.dot(h.astype(jnp.bfloat16), w2_ref[...],
                  preferred_element_type=jnp.float32) + b2_ref[...]
    o_ref[...] = out.astype(o_ref.dtype)


def classify_head(all_feature, w1t, b1, w2t, b2):
    """all_feature: (N, 4*C). w1t: (4*C, 512), w2t: (512, class_num) (bf16 ok)."""
    N = all_feature.shape[0]
    K = w2t.shape[1]
    return pl.pallas_call(
        _head_kernel,
        out_shape=jax.ShapeDtypeStruct((N, K), jnp.float32),
    )(
        all_feature,
        w1t.astype(jnp.bfloat16),
        b1.reshape(1, -1).astype(jnp.float32),
        w2t.astype(jnp.bfloat16),
        b2.reshape(1, -1).astype(jnp.float32),
    )


# -----------------------------------------------------------------------------
# Full forward (task_type == 'single' path), starting from backbone dec4 feats.
# -----------------------------------------------------------------------------
def universal_classify_forward(dec4_feats, params, *, feature_dtype=jnp.bfloat16,
                               force_two_pass=False):
    """dec4_feats: (O, N, C, D, H, W) — one 512-channel dec4 volume per organ."""
    O, N, C, D, H, W = dec4_feats.shape
    S = D * H * W
    x = dec4_feats.reshape(O * N, C, S)
    if feature_dtype is not None and x.dtype != feature_dtype:
        x = x.astype(feature_dtype)          # single cast: halves the dominant HBM read
    pooled = groupnorm_relu_gap(x, params["gn_gamma"], params["gn_beta"],
                                force_two_pass=force_two_pass)              # (O*N, C)
    pooled = pooled.reshape(O, N, C)
    # torch.cat(all_feature, dim=1): organ-major concat along channels.
    all_feature = jnp.transpose(pooled, (1, 0, 2)).reshape(N, O * C)        # (N, 4*C)
    return classify_head(all_feature, params["w1t"], params["b1"],
                         params["w2t"], params["b2"])                       # (N, class_num)


# -----------------------------------------------------------------------------
# Pure-JAX reference (mirrors PyTorch f32 semantics from the same bf16 feature
# representation and the provided bf16 head weights).
# -----------------------------------------------------------------------------
def reference_forward(dec4_feats, params, *, feature_dtype=jnp.bfloat16):
    O, N, C, D, H, W = dec4_feats.shape
    S = D * H * W
    x = dec4_feats.reshape(O * N, C, S)
    if feature_dtype is not None:
        x = x.astype(feature_dtype)
    x = x.reshape(O * N, GROUPS, C // GROUPS, S).astype(jnp.float32)
    mean = x.mean(axis=(2, 3), keepdims=True)
    var = ((x - mean) ** 2).mean(axis=(2, 3), keepdims=True)
    xn = (x - mean) / jnp.sqrt(var + EPS)
    y = xn.reshape(O * N, C, S) * params["gn_gamma"].astype(jnp.float32)[None, :, None] \
        + params["gn_beta"].astype(jnp.float32)[None, :, None]
    y = jnp.maximum(y, 0.0)
    pooled = y.mean(axis=2).reshape(O, N, C)
    all_feature = jnp.transpose(pooled, (1, 0, 2)).reshape(N, O * C)
    h = all_feature @ params["w1t"].astype(jnp.float32) + params["b1"]
    return h @ params["w2t"].astype(jnp.float32) + params["b2"]


if __name__ == "__main__":
    key = jax.random.PRNGKey(0)
    kx, kg, kb, kw1, kb1, kw2, kb2 = jax.random.split(key, 7)

    # 4 organs, batch 2, dec4 spatial 8x4x4 -> S = 128 (lane-aligned).
    O, N, C, D, H, W = 4, 2, FEAT_C, 8, 4, 4
    dec4 = jax.random.normal(kx, (O, N, C, D, H, W), jnp.float32)

    # Synthetic parameters (shapes from the module's __init__):
    #   GAP:           GroupNorm(16, 512) gamma/beta             -> (512,)
    #   classify_conv: Conv3d(512*class_num, 512, k=1) weight    -> stored transposed (2048, 512), bf16
    #   classify_head: Conv3d(512, class_num, k=1) weight        -> stored transposed (512, 4), bf16
    params = dict(
        gn_gamma=1.0 + 0.1 * jax.random.normal(kg, (C,), jnp.float32),
        gn_beta=0.1 * jax.random.normal(kb, (C,), jnp.float32),
        w1t=(0.02 * jax.random.normal(kw1, (O * C, 512), jnp.float32)).astype(jnp.bfloat16),
        b1=0.02 * jax.random.normal(kb1, (512,), jnp.float32),
        w2t=(0.02 * jax.random.normal(kw2, (512, CLASS_NUM), jnp.float32)).astype(jnp.bfloat16),
        b2=0.02 * jax.random.normal(kb2, (CLASS_NUM,), jnp.float32),
    )

    out = jax.block_until_ready(universal_classify_forward(dec4, params))
    ref = reference_forward(dec4, params)
    assert out.shape == (N, CLASS_NUM), out.shape
    # Tolerance accounts for the deliberate bf16 MXU head (f32 accumulation).
    np.testing.assert_allclose(np.asarray(out), np.asarray(ref), rtol=1e-2, atol=5e-3)

    # Also exercise the large-S two-pass fallback path and check it matches the
    # fused single-pass GAP (same bf16 input, f32 math; only chunking differs).
    xf = dec4.reshape(O * N, C, D * H * W).astype(jnp.bfloat16)
    pooled_fused = groupnorm_relu_gap(xf, params["gn_gamma"], params["gn_beta"])
    pooled_two = groupnorm_relu_gap(xf, params["gn_gamma"], params["gn_beta"],
                                    force_two_pass=True)
    jax.block_until_ready((pooled_fused, pooled_two))
    np.testing.assert_allclose(np.asarray(pooled_fused), np.asarray(pooled_two),
                               rtol=1e-4, atol=1e-4)

    print("KERNEL_OK")
</pallas_src>

<mosaic_0001>
module attributes {stable_mosaic.version = 11 : i64} {
  func.func @_gap_fused_kernel(%arg0: i32, %arg1: i32, %arg2: memref<1x16x32x128xbf16, #tpu.memory_space<vmem>>, %arg3: memref<16x32xf32, #tpu.memory_space<vmem>>, %arg4: memref<16x32xf32, #tpu.memory_space<vmem>>, %arg5: memref<1x16x32xf32, #tpu.memory_space<vmem>>) attributes {dimension_semantics = [#tpu.dimension_semantics<parallel>, #tpu.dimension_semantics<parallel>], iteration_bounds = array<i64: 8, 1>, scalar_prefetch = 0 : i64, scratch_operands = 0 : i64, tpu.core_type = #tpu.core_type<tc>, window_params = [{transform_indices = @transform_0, window_bounds = array<i64: 1, 16, 32, 128>}, {transform_indices = @transform_1, window_bounds = array<i64: 16, 32>}, {transform_indices = @transform_2, window_bounds = array<i64: 16, 32>}, {transform_indices = @transform_3, window_bounds = array<i64: 1, 16, 32>}]} {
    %c0 = arith.constant 0 : index
    %c0_0 = arith.constant 0 : index
    %c0_1 = arith.constant 0 : index
    %c0_2 = arith.constant 0 : index
    %0 = vector.load %arg2[%c0, %c0_0, %c0_1, %c0_2] : memref<1x16x32x128xbf16, #tpu.memory_space<vmem>>, vector<1x16x32x128xbf16>
    %1 = vector.shape_cast %0 : vector<1x16x32x128xbf16> to vector<16x32x128xbf16>
    %2 = arith.extf %1 : vector<16x32x128xbf16> to vector<16x32x128xf32>
    %cst = arith.constant dense<0.000000e+00> : vector<16x32xf32>
    %3 = vector.multi_reduction <add>, %2, %cst [2] : vector<16x32x128xf32> to vector<16x32xf32>
    %4 = arith.mulf %2, %2 : vector<16x32x128xf32>
    %cst_3 = arith.constant dense<0.000000e+00> : vector<16x32xf32>
    %5 = vector.multi_reduction <add>, %4, %cst_3 [2] : vector<16x32x128xf32> to vector<16x32xf32>
    %cst_4 = arith.constant dense<0.000000e+00> : vector<16xf32>
    %6 = vector.multi_reduction <add>, %3, %cst_4 [1] : vector<16x32xf32> to vector<16xf32>
    %7 = vector.shape_cast %6 : vector<16xf32> to vector<16x1xf32>
    %cst_5 = arith.constant dense<0.000000e+00> : vector<16xf32>
    %8 = vector.multi_reduction <add>, %5, %cst_5 [1] : vector<16x32xf32> to vector<16xf32>
    %9 = vector.shape_cast %8 : vector<16xf32> to vector<16x1xf32>
    %cst_6 = arith.constant 2.44140625E-4 : f32
    %10 = vector.broadcast %cst_6 : f32 to vector<16x1xf32>
    %11 = arith.mulf %7, %10 : vector<16x1xf32>
    %cst_7 = arith.constant 2.44140625E-4 : f32
    %12 = vector.broadcast %cst_7 : f32 to vector<16x1xf32>
    %13 = arith.mulf %9, %12 : vector<16x1xf32>
    %14 = arith.mulf %11, %11 : vector<16x1xf32>
    %15 = arith.subf %13, %14 : vector<16x1xf32>
    %cst_8 = arith.constant 0.000000e+00 : f32
    %16 = vector.broadcast %cst_8 : f32 to vector<16x1xf32>
    %17 = arith.maximumf %15, %16 : vector<16x1xf32>
    %cst_9 = arith.constant 9.99999974E-6 : f32
    %18 = vector.broadcast %cst_9 : f32 to vector<16x1xf32>
    %19 = arith.addf %17, %18 : vector<16x1xf32>
    %20 = math.rsqrt %19 : vector<16x1xf32>
    %c0_10 = arith.constant 0 : index
    %c0_11 = arith.constant 0 : index
    %21 = vector.load %arg3[%c0_10, %c0_11] : memref<16x32xf32, #tpu.memory_space<vmem>>, vector<16x32xf32>
    %22 = vector.broadcast %20 : vector<16x1xf32> to vector<16x32xf32>
    %23 = arith.mulf %21, %22 : vector<16x32xf32>
    %c0_12 = arith.constant 0 : index
    %c0_13 = arith.constant 0 : index
    %24 = vector.load %arg4[%c0_12, %c0_13] : memref<16x32xf32, #tpu.memory_space<vmem>>, vector<16x32xf32>
    %25 = vector.broadcast %11 : vector<16x1xf32> to vector<16x32xf32>
    %26 = arith.mulf %25, %23 : vector<16x32xf32>
    %27 = arith.subf %24, %26 : vector<16x32xf32>
    %28 = vector.shape_cast %23 : vector<16x32xf32> to vector<16x32x1xf32>
    %29 = vector.broadcast %28 : vector<16x32x1xf32> to vector<16x32x128xf32>
    %30 = arith.mulf %2, %29 : vector<16x32x128xf32>
    %31 = vector.shape_cast %27 : vector<16x32xf32> to vector<16x32x1xf32>
    %32 = vector.broadcast %31 : vector<16x32x1xf32> to vector<16x32x128xf32>
    %33 = arith.addf %30, %32 : vector<16x32x128xf32>
    %cst_14 = arith.constant 0.000000e+00 : f32
    %34 = vector.broadcast %cst_14 : f32 to vector<16x32x128xf32>
    %35 = arith.maximumf %33, %34 : vector<16x32x128xf32>
    %cst_15 = arith.constant dense<0.000000e+00> : vector<16x32xf32>
    %36 = vector.multi_reduction <add>, %35, %cst_15 [2] : vector<16x32x128xf32> to vector<16x32xf32>
    %cst_16 = arith.constant 7.812500e-03 : f32
    %37 = vector.broadcast %cst_16 : f32 to vector<16x32xf32>
    %38 = arith.mulf %36, %37 : vector<16x32xf32>
    %c0_17 = arith.constant 0 : index
    %c0_18 = arith.constant 0 : index
    %c0_19 = arith.constant 0 : index
    %39 = vector.load %arg5[%c0_17, %c0_18, %c0_19] : memref<1x16x32xf32, #tpu.memory_space<vmem>>, vector<1x16x32xf32>
    %40 = vector.shape_cast %39 : vector<1x16x32xf32> to vector<16x32xf32>
    %41 = vector.shape_cast %38 : vector<16x32xf32> to vector<1x16x32xf32>
    tpu.vector_store %arg5[%c0_17, %c0_18, %c0_19], %41 {strides = array<i32>} : memref<1x16x32xf32, #tpu.memory_space<vmem>>, vector<1x16x32xf32>,
    return
  }
  func.func @transform_0(%arg0: i32, %arg1: i32) -> (i32, i32, i32, i32) {
    %c0_i32 = arith.constant 0 : i32
    %c0_i32_0 = arith.constant 0 : i32
    %c0_i32_1 = arith.constant 0 : i32
    return %arg0, %arg1, %c0_i32, %c0_i32_0 : i32, i32, i32, i32
  }
  func.func @transform_1(%arg0: i32, %arg1: i32) -> (i32, i32) {
    %c0_i32 = arith.constant 0 : i32
    %c0_i32_0 = arith.constant 0 : i32
    return %arg1, %c0_i32 : i32, i32
  }
  func.func @transform_2(%arg0: i32, %arg1: i32) -> (i32, i32) {
    %c0_i32 = arith.constant 0 : i32
    %c0_i32_0 = arith.constant 0 : i32
    return %arg1, %c0_i32 : i32, i32
  }
  func.func @transform_3(%arg0: i32, %arg1: i32) -> (i32, i32, i32) {
    %c0_i32 = arith.constant 0 : i32
    %c0_i32_0 = arith.constant 0 : i32
    return %arg0, %arg1, %c0_i32 : i32, i32, i32
  }
}

</mosaic_0001>

<bundles_post_ra>
// kernel: tpu_custom_call.1
= control target key start
LH: loop header
LB: loop body
LE: loop exit
PB: predicated region body
PF: predicated region fallthrough
CT: control target
= control target key end

     0   :  { %8 = vsyncpa [#allocation3], 0  ;;  %s4969_s0 = inlined_call_operand.hbm [shape: bf16[8,16,32,128], index: 0, kind: input, shape index: {}]   ;;  %s4970_s1 = inlined_call_operand.hbm [shape: f32[16,32], index: 1, kind: input, shape index: {}]   ;;  %s4971_s2 = inlined_call_operand.hbm [shape: f32[16,32], index: 2, kind: input, shape index: {}]   ;;  %s4972_s3 = inlined_call_operand.hbm [shape: f32[8,16,32], index: 3, kind: output, shape index: {}]  }
   0x1   :  { %10 = vsyncpa [#allocation3 + $0x1], 0 }
   0x2   :  { %11 = vsyncpa [#allocation6], 0 }
   0x3   :  { %12 = vsyncpa [#allocation4], 0 }
   0x4   :  { %14 = vsyncpa [#allocation4 + $0x1], 0  ;;  %s3498_s12 = smov 0   ;;  %s3500_s13 = smov 0  }
   0x5   :  { %s3502_s14 = smov 0   ;;  %s3504_s15 = smov 0  }
   0x6   :  { %s3506_s16 = smov 0   ;;  %s3508_s17 = smov 0  }
   0x7 LB: > { %s3029_s18 = sadd.s32 4294967295, %s3466_s17   ;;  %s3030_s19 = sadd.s32 4294967294, %s3466_s17   ;;  %s3466_s17 = sphi %s3508_s17, %s20_s17   ;;  %s3462_s16 = sphi %s3506_s16, %s5279_s16   ;;  %s3458_s15 = sphi %s3504_s15, %s5278_s15   ;;  %s3454_s14 = sphi %s3502_s14, %s5277_s14   ;;  %s3450_s13 = sphi %s3500_s13, %s5276_s13   ;;  %s3446_s12 = sphi %s3498_s12, %s5275_s12  }
   0x8   : > { %p54_p0 = scmp.ne.s32.totalorder %s3450_s13, %s3446_s12  ;;  %p3532_p1 = scmp.eq.s32.totalorder %s3029_s18, 0 }
   0x9   : > { %p3536_p2 = scmp.eq.s32.totalorder %s3029_s18, 7  ;;  %p138_p3 = scmp.eq.s32.totalorder %s3030_s19, 7 }
   0xa   : > { %s5049_s20 = scalar_select %p3532_p1, 1, 0 }
   0xb   : > { %p3542_p4 = por %p3532_p1, %p54_p0  ;;  %p3031_p5 = scmp.ge.s32.totalorder %s3466_s17, 1 }
   0xc   : > { %p3547_p6 = por %p138_p3, %p54_p0  ;;  %p145_p7 = scmp.lt.s32.totalorder %s3466_s17, 9 }
   0xd   : > { %s5051_s22 = scalar_select %p3542_p4, 1, 0 }
   0xe   : > { %s5052_s23 = scalar_select %p3547_p6, 1, 0 }
   0xf   : > { %p3552_p8 = pnand %p3031_p5, %p145_p7  ;;  %s3468_s25 = smov [#allocation5]  }
  0x10   : > { %s160_s26 = sshll.u32 %s3468_s25, 4  ;;  %s3469_s28 = smov [#allocation7]   ;;  %s161_s26 = int_to_ptr.vmem [resolvable:$true] %s160_s26 }
  0x11   : > { %p3221_p9 = pneg %p3552_p8  ;;  %s176_s29 = sshll.u32 %s3469_s28, 4  ;;  %s177_s29 = int_to_ptr.vmem [resolvable:$true] %s176_s29 }
  0x12   : > { %s3313_s30 = scalar_lea.vmem %s161_s26, 256  ;;  %p3321_p3 = scmp.lt.s32.totalorder %s161_s26, %s161_s26 }
  0x13   : > { %p3560_p10 = pnand %p3221_p9, %p3532_p1  ;;  %p3314_p12 = scmp.ne.s32.totalorder %s161_s26, %s3313_s30 }
  0x14   : > { %p3322_p5 = scmp.lt.s32.totalorder %s3313_s30, %s3313_s30 }
  0x15   : > { %p3304_p11 = pneg %p3560_p10 }
  0x16   : > { %p3323_p7 = por %p3322_p5, %p3321_p3 }
  0x17   : > { %p3316_p13 = pnand %p3314_p12, %p3304_p11 }
  0x19   : > { %p3317_p0 = pneg %p3316_p13 }
  0x1b   : > { %p3324_p9 = pnand %p3323_p7, %p3317_p0 }
  0x1d   : > { %3327 = shalt.err (!%p3324_p9)
}
  0x1e   : > { %s3470_s4 = smov 128   ;;  %s3471_s5 = smov 8  }
  0x1f   : > { %3224 = dma.hbm_to_vmem [thread:$0]  (!%p3560_p10), %s4970_s1, 256, %s161_s26, [#allocation6], %s3470_s4, %s3470_s4, %s3471_s5  }
  0x20   : > { %s3339_s8 = scalar_lea.vmem %s177_s29, 256  ;;  %p3347_p1 = scmp.lt.s32.totalorder %s177_s29, %s177_s29 }
  0x21   : > { %p3340_p6 = scmp.ne.s32.totalorder %s177_s29, %s3339_s8  ;;  %p3348_p4 = scmp.lt.s32.totalorder %s3339_s8, %s3339_s8 }
  0x23   : > { %p3342_p12 = pnand %p3340_p6, %p3304_p11  ;;  %p3349_p3 = por %p3348_p4, %p3347_p1 }
  0x25   : > { %p3343_p13 = pneg %p3342_p12 }
  0x27   : > { %p3350_p0 = pnand %p3349_p3, %p3343_p13 }
  0x29   : > { %3353 = shalt.err (!%p3350_p0)
}
  0x2a   : > { %3227 = dma.hbm_to_vmem [thread:$0]  (!%p3560_p10), %s4971_s2, 256, %s177_s29, [#allocation6], %s3470_s4, %s3470_s4, %s3471_s5  }
  0x2b   : > { %s32_s11 = sadd.s32 1, %s3462_s16  ;;  %s41_s18 = sadd.s32 1, %s3454_s14 }
  0x2c   : > { %p34_p1 = scmp.ge.s32.totalorder %s32_s11, 8  ;;  %p48_p4 = scmp.ne.s32.totalorder %s3454_s14, %s3450_s13 }
  0x2d   : > { %p49_p6 = scmp.eq.s32.totalorder %s3466_s17, 0  ;;  %p3238_p11 = scmp.lt.s32.totalorder %s3466_s17, 8 }
  0x2e   : > { %s5281_s11 = smov (%p34_p1, %s32_s11), 0  ;;  %p3592_p7 = por %p3536_p2, %p48_p4 }
  0x2f   : > { %p50_p5 = por %p49_p6, %p48_p4  ;;  %s36_s25 = ssub.s32 %s3462_s16, %s5281_s11 }
  0x30   : > { %s190_s26 = sand.u32 1, %s3454_s14   ;;  %p39_p9 = scmp.eq.s32.totalorder %s36_s25, 0 }
  0x31   : > { %s3035_s27 = sshll.u32 %s190_s26, 8  ;;  %s3048_s28 = sshll.u32 %s3462_s16, 12 }
  0x32   : > { %s3601_s29 = scalar_select %p39_p9, %s3454_s14, %s41_s18  }
  0x33   : > { %s203_s5 = scalar_lea.hbm %s4969_s0, %s3048_s28  ;;  %s194_s6 = scalar_lea.vmem [#allocation2], %s3035_s27 }
  0x34   : > { %s204_s7 = sshll.u32 %s194_s6, 4  ;;  %p3608_p10 = pnand %p3238_p11, %p50_p5  ;;  %s205_s7 = int_to_ptr.vmem [resolvable:$true] %s204_s7 }
  0x35   : > { %s191_s8 = scalar_lea.sflag [#allocation3], %s190_s26  ;;  %s3367_s9 = scalar_lea.vmem %s205_s7, 4096 }
  0x36   : > { %p3356_p2 = pneg %p3608_p10  ;;  %p3368_p12 = scmp.ne.s32.totalorder %s205_s7, %s3367_s9 }
  0x37   : > { %s3472_s10 = smov [#allocation2]  }
  0x38   : > { %p3370_p13 = pnand %p3368_p12, %p3356_p2  ;;  %s3372_s18 = sshll.u32 %s3472_s10, 4  ;;  %s3373_s18 = int_to_ptr.vmem [resolvable:$false] %s3372_s18 }
  0x39   : > { %s3374_s25 = scalar_lea.vmem %s3373_s18, 8192  ;;  %p3375_p0 = scmp.lt.s32.totalorder %s205_s7, %s3373_s18 }
  0x3a   : > { %p3371_p3 = pneg %p3370_p13  ;;  %p3376_p1 = scmp.lt.s32.totalorder %s3374_s25, %s3367_s9 }
  0x3c   : > { %p3377_p4 = por %p3376_p1, %p3375_p0 }
  0x3e   : > { %p3378_p6 = pnand %p3377_p4, %p3371_p3 }
  0x40   : > { %3381 = shalt.err (!%p3378_p6)
}
  0x41   : > { %s3473_s27 = smov 64   ;;  %s3474_s28 = smov 4  }
  0x42   : > { %3231 = dma.hbm_to_vmem [thread:$0]  (!%p3608_p10), %s203_s5, 4096, %s205_s7, %s191_s8, %s3473_s27, %s3473_s27, %s3474_s28  }
  0x43   : > { %216 = sbr.rel (%p3552_p8) target bundleno = 1148 (0x47c), region = 32 }
  0x48   : > { %s3619_s26 = sand.u32 1, %s3450_s13   ;;  %p5057_p11 = scmp.ne.s32.totalorder %s5051_s22, 0 }
  0x49   : > { %s3039_s30 = sshll.u32 %s3619_s26, 8  ;;  %s219_s4 = scalar_lea.sflag [#allocation3], %s3619_s26 }
  0x4a   : > { %s3623_s6 = scalar_lea.vmem [#allocation2], %s3039_s30 }
  0x4b   : > { %3433 = dma.done.wait (%p5057_p11), %s219_s4, 4096  }
  0x4c   : > { %3435 = vsyncadd (%p5057_p11), %s219_s4, 4294963200  ;;  %p5058_p5 = scmp.ne.s32.totalorder %s5049_s20, 0 }
  0x4e   : > { %3437 = dma.done.wait (%p5058_p5), [#allocation6], 512  }
  0x4f   : > { %3439 = vsyncadd (%p5058_p5), [#allocation6], 4294966784  ;;  %v3178_v0 = vld [vmem:[%s3623_s6 + $0x8] sm:$0xff]   ;;  %v3051_v1 = vld [vmem:[%s3623_s6] sm:$0xff]   ;;  %vm780_vm0 = vcmask 130112   ;;  %vm787_vm1 = vcmask 195712  }
  0x50   : > { %v3635_v2 = vunpack.c.l.bf16 %v3178_v0  ;;  %v3637_v3 = vunpack.c.l.bf16 %v3051_v1  ;;  %v3641_v4 = vunpack.c.h.bf16 %v3178_v0  ;;  %v3643_v5 = vunpack.c.h.bf16 %v3051_v1  ;;  %v3179_v6 = vld [vmem:[%s3623_s6 + $0x10] sm:$0xff]   ;;  %v3180_v9 = vld [vmem:[%s3623_s6 + $0x18] sm:$0xff]   ;;  %v3181_v12 = vld [vmem:[%s3623_s6 + $0x20] sm:$0xff]   ;;  %s3042_s20 = sshll.u32 %s3619_s26, 4  ;;  %s3049_s22 = sshll.u32 %s3458_s15, 8 }
  0x51   : > { %v3648_v7 = vunpack.c.h.bf16 %v3179_v6  ;;  %v3650_v8 = vunpack.c.l.bf16 %v3179_v6  ;;  %v3655_v10 = vunpack.c.h.bf16 %v3180_v9  ;;  %v3657_v11 = vunpack.c.l.bf16 %v3180_v9  ;;  %v3182_v15 = vld [vmem:[%s3623_s6 + $0x28] sm:$0xff]   ;;  %v3183_v18 = vld [vmem:[%s3623_s6 + $0x30] sm:$0xff]   ;;  %v3184_v21 = vld [vmem:[%s3623_s6 + $0x38] sm:$0xff]   ;;  %s252_s24 = scalar_lea.vmem [#allocation8], %s3042_s20  ;;  %s4914_s21 = scalar_lea.hbm %s4972_s3, %s3049_s22 }
  0x52   : > { %5059 = vst [vmem:[#allocation12_spill] sm:$0xff] %v3635_v2  ;;  %5060 = vst [vmem:[#allocation13_spill] sm:$0xff] %v3637_v3  ;;  %389 = vadd.xlane.f32.xlu1 %v3635_v2  ;;  %385 = vadd.xlane.f32.xlu0 %v3637_v3  ;;  %v3662_v13 = vunpack.c.h.bf16 %v3181_v12  ;;  %v3664_v14 = vunpack.c.l.bf16 %v3181_v12  ;;  %v3669_v16 = vunpack.c.h.bf16 %v3182_v15  ;;  %v3671_v17 = vunpack.c.l.bf16 %v3182_v15  ;;  %v3185_v24 = vld [vmem:[%s3623_s6 + $0x40] sm:$0xff]   ;;  %v3186_v27 = vld [vmem:[%s3623_s6 + $0x48] sm:$0xff]   ;;  %s2919_s5 = sshll.u32 %s252_s24, 4  ;;  %s2904_s8 = scalar_lea.sflag [#allocation4], %s3619_s26  ;;  %s4916_s5 = int_to_ptr.vmem [resolvable:$true] %s2919_s5 }
  0x53   : > { %5061 = vst [vmem:[#allocation14_spill] sm:$0xff] %v3641_v4  ;;  %5062 = vst [vmem:[#allocation15_spill] sm:$0xff] %v3643_v5  ;;  %v3676_v19 = vunpack.c.h.bf16 %v3183_v18  ;;  %v3678_v20 = vunpack.c.l.bf16 %v3183_v18  ;;  %v3683_v22 = vunpack.c.h.bf16 %v3184_v21  ;;  %v3685_v23 = vunpack.c.l.bf16 %v3184_v21  ;;  %v3187_v30 = vld [vmem:[%s3623_s6 + $0x50] sm:$0xff]   ;;  %v3188_v33 = vld [vmem:[%s3623_s6 + $0x58] sm:$0xff]   ;;  %s3382_s9 = scalar_lea.vmem %s4916_s5, 256  ;;  %s3475_s10 = smov [#allocation8]  }
  0x54   : > { %5063 = vst [vmem:[#allocation16_spill] sm:$0xff] %v3648_v7  ;;  %5064 = vst [vmem:[#allocation17_spill] sm:$0xff] %v3650_v8  ;;  %v3690_v25 = vunpack.c.h.bf16 %v3185_v24  ;;  %v3692_v26 = vunpack.c.l.bf16 %v3185_v24  ;;  %v3697_v28 = vunpack.c.h.bf16 %v3186_v27  ;;  %v3699_v29 = vunpack.c.l.bf16 %v3186_v27  ;;  %v3189_v36 = vld [vmem:[%s3623_s6 + $0x60] sm:$0xff]   ;;  %v3190_v39 = vld [vmem:[%s3623_s6 + $0x68] sm:$0xff]   ;;  %p3383_p8 = scmp.ne.s32.totalorder %s4916_s5, %s3382_s9  ;;  %s3386_s18 = sshll.u32 %s3475_s10, 4  ;;  %s3387_s18 = int_to_ptr.vmem [resolvable:$false] %s3386_s18 }
  0x55   : > { %5065 = vst [vmem:[#allocation18_spill] sm:$0xff] %v3655_v10  ;;  %5066 = vst [vmem:[#allocation19_spill] sm:$0xff] %v3657_v11  ;;  %v3704_v31 = vunpack.c.h.bf16 %v3187_v30  ;;  %v3706_v32 = vunpack.c.l.bf16 %v3187_v30  ;;  %v3711_v34 = vunpack.c.h.bf16 %v3188_v33  ;;  %v3713_v35 = vunpack.c.l.bf16 %v3188_v33  ;;  %v3191_v42 = vld [vmem:[%s3623_s6 + $0x70] sm:$0xff]   ;;  %v3192_v45 = vld [vmem:[%s3623_s6 + $0x78] sm:$0xff]   ;;  %s3388_s25 = scalar_lea.vmem %s3387_s18, 512  ;;  %p3389_p2 = scmp.lt.s32.totalorder %s4916_s5, %s3387_s18 }
  0x56   : > { %391 = vadd.xlane.f32.xlu1 %v3641_v4  ;;  %387 = vadd.xlane.f32.xlu0 %v3643_v5  ;;  %5067 = vst [vmem:[#allocation20_spill] sm:$0xff] %v3662_v13  ;;  %5068 = vst [vmem:[#allocation21_spill] sm:$0xff] %v3664_v14  ;;  %v3718_v37 = vunpack.c.h.bf16 %v3189_v36  ;;  %v3720_v38 = vunpack.c.l.bf16 %v3189_v36  ;;  %v3725_v40 = vunpack.c.h.bf16 %v3190_v39  ;;  %v3727_v41 = vunpack.c.l.bf16 %v3190_v39  ;;  %v3193_v48 = vld [vmem:[%s3623_s6 + $0x80] sm:$0xff]   ;;  %v3194_v51 = vld [vmem:[%s3623_s6 + $0x88] sm:$0xff]   ;;  %p3384_p9 = pnand %p3383_p8, %p3592_p7  ;;  %p3390_p12 = scmp.lt.s32.totalorder %s3388_s25, %s3382_s9 }
  0x57   : > { %5069 = vst [vmem:[#allocation22_spill] sm:$0xff] %v3704_v31  ;;  %5070 = vst [vmem:[#allocation23_spill] sm:$0xff] %v3706_v32  ;;  %v3732_v43 = vunpack.c.h.bf16 %v3191_v42  ;;  %v3734_v44 = vunpack.c.l.bf16 %v3191_v42  ;;  %v3739_v46 = vunpack.c.h.bf16 %v3192_v45  ;;  %v3741_v47 = vunpack.c.l.bf16 %v3192_v45  ;;  %v3195_v54 = vld [vmem:[%s3623_s6 + $0x90] sm:$0xff]   ;;  %v3196_v57 = vld [vmem:[%s3623_s6 + $0x98] sm:$0xff]  }
  0x58   : > { %5071 = vst [vmem:[#allocation24_spill] sm:$0xff] %v3711_v34  ;;  %5072 = vst [vmem:[#allocation25_spill] sm:$0xff] %v3713_v35  ;;  %v3746_v49 = vunpack.c.h.bf16 %v3193_v48  ;;  %v3748_v50 = vunpack.c.l.bf16 %v3193_v48  ;;  %v3753_v52 = vunpack.c.h.bf16 %v3194_v51  ;;  %v3755_v53 = vunpack.c.l.bf16 %v3194_v51  ;;  %v3197_v60 = vld [vmem:[%s3623_s6 + $0xa0] sm:$0xff]   ;;  %v3198_v63 = vld [vmem:[%s3623_s6 + $0xa8] sm:$0xff]   ;;  %p3385_p10 = pneg %p3384_p9  ;;  %p3391_p13 = por %p3390_p12, %p3389_p2 }
  0x59   : > { %5073 = vst [vmem:[#allocation26_spill] sm:$0xff] %v3718_v37  ;;  %5074 = vst [vmem:[#allocation27_spill] sm:$0xff] %v3720_v38  ;;  %v3760_v55 = vunpack.c.h.bf16 %v3195_v54  ;;  %v3762_v56 = vunpack.c.l.bf16 %v3195_v54  ;;  %v3767_v58 = vunpack.c.h.bf16 %v3196_v57  ;;  %v3769_v59 = vunpack.c.l.bf16 %v3196_v57  ;;  %v3199_v6 = vld [vmem:[%s3623_s6 + $0xb0] sm:$0xff]   ;;  %v3200_v15 = vld [vmem:[%s3623_s6 + $0xb8] sm:$0xff]  }
  0x5a   : > { %395 = vadd.xlane.f32.xlu1 %v3648_v7  ;;  %393 = vadd.xlane.f32.xlu0 %v3650_v8  ;;  %5075 = vst [vmem:[#allocation28_spill] sm:$0xff] %v3725_v40  ;;  %5076 = vst [vmem:[#allocation29_spill] sm:$0xff] %v3727_v41  ;;  %v3774_v61 = vunpack.c.h.bf16 %v3197_v60  ;;  %v3776_v62 = vunpack.c.l.bf16 %v3197_v60  ;;  %v3781_v0 = vunpack.c.h.bf16 %v3198_v63  ;;  %v3783_v1 = vunpack.c.l.bf16 %v3198_v63  ;;  %v3201_v24 = vld [vmem:[%s3623_s6 + $0xc0] sm:$0xff]   ;;  %v3202_v33 = vld [vmem:[%s3623_s6 + $0xc8] sm:$0xff]   ;;  %p3392_p3 = pnand %p3391_p13, %p3385_p10 }
  0x5b   : > { %5077 = vst [vmem:[#allocation30_spill] sm:$0xff] %v3732_v43  ;;  %5078 = vst [vmem:[#allocation31_spill] sm:$0xff] %v3734_v44  ;;  %v3788_v9 = vunpack.c.h.bf16 %v3199_v6  ;;  %v3790_v12 = vunpack.c.l.bf16 %v3199_v6  ;;  %v3795_v18 = vunpack.c.h.bf16 %v3200_v15  ;;  %v3797_v21 = vunpack.c.l.bf16 %v3200_v15  ;;  %v3203_v42 = vld [vmem:[%s3623_s6 + $0xd0] sm:$0xff]   ;;  %v3204_v51 = vld [vmem:[%s3623_s6 + $0xd8] sm:$0xff]  }
  0x5c   : > { %5079 = vst [vmem:[#allocation32_spill] sm:$0xff] %v3739_v46  ;;  %5080 = vst [vmem:[#allocation33_spill] sm:$0xff] %v3741_v47  ;;  %v3802_v27 = vunpack.c.h.bf16 %v3201_v24  ;;  %v3804_v30 = vunpack.c.l.bf16 %v3201_v24  ;;  %v3809_v36 = vunpack.c.h.bf16 %v3202_v33  ;;  %v3811_v39 = vunpack.c.l.bf16 %v3202_v33  ;;  %v3205_v60 = vld [vmem:[%s3623_s6 + $0xe0] sm:$0xff]   ;;  %v3206_v15 = vld [vmem:[%s3623_s6 + $0xe8] sm:$0xff]  }
  0x5d   : > { %5081 = vst [vmem:[#allocation34_spill] sm:$0xff] %v3746_v49  ;;  %5082 = vst [vmem:[#allocation35_spill] sm:$0xff] %v3748_v50  ;;  %v3816_v45 = vunpack.c.h.bf16 %v3203_v42  ;;  %v3818_v48 = vunpack.c.l.bf16 %v3203_v42  ;;  %v3823_v54 = vunpack.c.h.bf16 %v3204_v51  ;;  %v3825_v57 = vunpack.c.l.bf16 %v3204_v51  ;;  %v3207_v42 = vld [vmem:[%s3623_s6 + $0xf0] sm:$0xff]  }
  0x5e   : > { %399 = vadd.xlane.f32.xlu1 %v3655_v10  ;;  %397 = vadd.xlane.f32.xlu0 %v3657_v11  ;;  %5083 = vst [vmem:[#allocation36_spill] sm:$0xff] %v3753_v52  ;;  %5084 = vst [vmem:[#allocation37_spill] sm:$0xff] %v3755_v53  ;;  %v3830_v63 = vunpack.c.h.bf16 %v3205_v60  ;;  %v3832_v6 = vunpack.c.l.bf16 %v3205_v60  ;;  %v3837_v24 = vunpack.c.h.bf16 %v3206_v15  ;;  %v3839_v33 = vunpack.c.l.bf16 %v3206_v15  ;;  %v3208_v60 = vld [vmem:[%s3623_s6 + $0xf8] sm:$0xff]  }
  0x5f   : > { %5085 = vst [vmem:[#allocation38_spill] sm:$0xff] %v3760_v55  ;;  %5086 = vst [vmem:[#allocation39_spill] sm:$0xff] %v3762_v56  ;;  %v3844_v51 = vunpack.c.h.bf16 %v3207_v42  ;;  %v514_v15 = vmul.f32 %v3643_v5, %v3643_v5  ;;  %v517_v5 = vmul.f32 %v3650_v8, %v3650_v8  ;;  %vm794_vm2 = vcmask 261312  }
  0x60   : > { %5087 = vst [vmem:[#allocation40_spill] sm:$0xff] %v3767_v58  ;;  %5088 = vst [vmem:[#allocation41_spill] sm:$0xff] %v3769_v59  ;;  %vm1081_vm3 = vcmask 1041409   ;;  %vm1083_vm4 = vcmask 1042434   ;;  %vm1085_vm5 = vcmask 1043459   ;;  %vm1087_vm6 = vcmask 1044484  }
  0x61   : > { %5089 = vst [vmem:[#allocation42_spill] sm:$0xff] %v3774_v61  ;;  %5090 = vst [vmem:[#allocation43_spill] sm:$0xff] %v3776_v62  ;;  %vm1089_vm7 = vcmask 1045509   ;;  %vm1091_vm8 = vcmask 1046534   ;;  %vm1093_vm9 = vcmask 1047559   ;;  %vm1104_vm10 = vcmask 261120  }
  0x62   : > { %403 = vadd.xlane.f32.xlu1 %v3662_v13  ;;  %401 = vadd.xlane.f32.xlu0 %v3664_v14  ;;  %5091 = vst [vmem:[#allocation44_spill] sm:$0xff] %v3781_v0  ;;  %5092 = vst [vmem:[#allocation45_spill] sm:$0xff] %v3783_v1 }
  0x63   : > { %5093 = vst [vmem:[#allocation46_spill] sm:$0xff] %v3788_v9  ;;  %5094 = vst [vmem:[#allocation47_spill] sm:$0xff] %v3790_v12 }
  0x64   : > { %5095 = vst [vmem:[#allocation48_spill] sm:$0xff] %v3795_v18  ;;  %5096 = vst [vmem:[#allocation49_spill] sm:$0xff] %v3797_v21 }
  0x65   : > { %5097 = vst [vmem:[#allocation50_spill] sm:$0xff] %v3802_v27  ;;  %5098 = vst [vmem:[#allocation51_spill] sm:$0xff] %v3804_v30 }
  0x66   : > { %407 = vadd.xlane.f32.xlu1 %v3669_v16  ;;  %405 = vadd.xlane.f32.xlu0 %v3671_v17  ;;  %5099 = vst [vmem:[#allocation52_spill] sm:$0xff] %v3809_v36  ;;  %5100 = vst [vmem:[#allocation53_spill] sm:$0xff] %v3811_v39 }
  0x67   : > { %5101 = vst [vmem:[#allocation54_spill] sm:$0xff] %v3816_v45  ;;  %5102 = vst [vmem:[#allocation55_spill] sm:$0xff] %v3818_v48 }
  0x68   : > { %5103 = vst [vmem:[#allocation56_spill] sm:$0xff] %v3823_v54  ;;  %5104 = vst [vmem:[#allocation57_spill] sm:$0xff] %v3825_v57 }
  0x69   : > { %5105 = vst [vmem:[#allocation58_spill] sm:$0xff] %v3830_v63  ;;  %5106 = vst [vmem:[#allocation59_spill] sm:$0xff] %v3832_v6 }
  0x6a   : > { %411 = vadd.xlane.f32.xlu1 %v3676_v19  ;;  %409 = vadd.xlane.f32.xlu0 %v3678_v20  ;;  %5107 = vst [vmem:[#allocation60_spill] sm:$0xff] %v3837_v24  ;;  %5108 = vst [vmem:[#allocation61_spill] sm:$0xff] %v3839_v33 }
  0x6b   : > { %5109 = vst [vmem:[#allocation62_spill] sm:$0xff] %v3844_v51 }
  0x6e   : > { %415 = vadd.xlane.f32.xlu1 %v3683_v22  ;;  %413 = vadd.xlane.f32.xlu0 %v3685_v23 }
  0x72   : > { %419 = vadd.xlane.f32.xlu1 %v3690_v25  ;;  %417 = vadd.xlane.f32.xlu0 %v3692_v26 }
  0x76   : > { %423 = vadd.xlane.f32.xlu1 %v3697_v28  ;;  %421 = vadd.xlane.f32.xlu0 %v3699_v29 }
  0x7a   : > { %427 = vadd.xlane.f32.xlu1 %v3704_v31  ;;  %425 = vadd.xlane.f32.xlu0 %v3706_v32 }
  0x7e   : > { %431 = vadd.xlane.f32.xlu1 %v3711_v34  ;;  %429 = vadd.xlane.f32.xlu0 %v3713_v35 }
  0x82   : > { %435 = vadd.xlane.f32.xlu1 %v3718_v37  ;;  %433 = vadd.xlane.f32.xlu0 %v3720_v38 }
  0x86   : > { %439 = vadd.xlane.f32.xlu1 %v3725_v40  ;;  %437 = vadd.xlane.f32.xlu0 %v3727_v41 }
  0x8a   : > { %443 = vadd.xlane.f32.xlu1 %v3732_v43  ;;  %441 = vadd.xlane.f32.xlu0 %v3734_v44 }
  0x8e   : > { %447 = vadd.xlane.f32.xlu1 %v3739_v46  ;;  %445 = vadd.xlane.f32.xlu0 %v3741_v47 }
  0x92   : > { %451 = vadd.xlane.f32.xlu1 %v3746_v49  ;;  %449 = vadd.xlane.f32.xlu0 %v3748_v50 }
  0x96   : > { %455 = vadd.xlane.f32.xlu1 %v3753_v52  ;;  %453 = vadd.xlane.f32.xlu0 %v3755_v53 }
  0x9a   : > { %459 = vadd.xlane.f32.xlu1 %v3760_v55  ;;  %457 = vadd.xlane.f32.xlu0 %v3762_v56 }
  0x9e   : > { %463 = vadd.xlane.f32.xlu1 %v3767_v58  ;;  %461 = vadd.xlane.f32.xlu0 %v3769_v59 }
  0xa2   : > { %467 = vadd.xlane.f32.xlu1 %v3774_v61  ;;  %465 = vadd.xlane.f32.xlu0 %v3776_v62 }
  0xa6   : > { %471 = vadd.xlane.f32.xlu1 %v3781_v0  ;;  %469 = vadd.xlane.f32.xlu0 %v3783_v1 }
  0xaa   : > { %475 = vadd.xlane.f32.xlu1 %v3788_v9  ;;  %473 = vadd.xlane.f32.xlu0 %v3790_v12 }
  0xae   : > { %479 = vadd.xlane.f32.xlu1 %v3795_v18  ;;  %477 = vadd.xlane.f32.xlu0 %v3797_v21 }
  0xb2   : > { %483 = vadd.xlane.f32.xlu1 %v3802_v27  ;;  %481 = vadd.xlane.f32.xlu0 %v3804_v30 }
  0xb6   : > { %487 = vadd.xlane.f32.xlu1 %v3809_v36  ;;  %485 = vadd.xlane.f32.xlu0 %v3811_v39 }
  0xba   : > { %491 = vadd.xlane.f32.xlu1 %v3816_v45  ;;  %489 = vadd.xlane.f32.xlu0 %v3818_v48 }
  0xbe   : > { %495 = vadd.xlane.f32.xlu1 %v3823_v54  ;;  %493 = vadd.xlane.f32.xlu0 %v3825_v57  ;;  %v3846_v54 = vunpack.c.l.bf16 %v3207_v42  ;;  %v513_v42 = vmul.f32 %v3637_v3, %v3637_v3 }
  0xc0   : > { %5110 = vst [vmem:[#allocation63_spill] sm:$0xff] %v3846_v54 }
  0xc2   : > { %499 = vadd.xlane.f32.xlu1 %v3830_v63  ;;  %497 = vadd.xlane.f32.xlu0 %v3832_v6  ;;  %v3851_v63 = vunpack.c.h.bf16 %v3208_v60  ;;  %v3853_v6 = vunpack.c.l.bf16 %v3208_v60  ;;  %v515_v60 = vmul.f32 %v3635_v2, %v3635_v2 }
  0xc4   : > { %5111 = vst [vmem:[#allocation64_spill] sm:$0xff] %v3851_v63  ;;  %5112 = vst [vmem:[#allocation65_spill] sm:$0xff] %v3853_v6 }
  0xc6   : > { %503 = vadd.xlane.f32.xlu1 %v3837_v24  ;;  %501 = vadd.xlane.f32.xlu0 %v3839_v33  ;;  %v769_v24 = vlaneseq }
  0xca   : > { %507 = vadd.xlane.f32.xlu1 %v3844_v51  ;;  %505 = vadd.xlane.f32.xlu0 %v3846_v54  ;;  %v516_v51 = vmul.f32 %v3641_v4, %v3641_v4  ;;  %v770_v54 = vand.u32 127, %v769_v24  ;;  %v520_v4 = vmul.f32 %v3655_v10, %v3655_v10  ;;  %v521_v10 = vmul.f32 %v3664_v14, %v3664_v14 }
  0xcc   : > { %v789_v3 = vadd.s32 4294967272, %v770_v54 }
  0xce   : > { %511 = vadd.xlane.f32.xlu1 %v3851_v63  ;;  %509 = vadd.xlane.f32.xlu0 %v3853_v6  ;;  %v518_v63 = vmul.f32 %v3648_v7, %v3648_v7  ;;  %v3869_v6 = vshrl.u32 %v769_v24, 7 }
  0xd0   : > { %5113 = vst [vmem:[#allocation66_spill] sm:$0xff] %v3869_v6  ;;  %v3876_v7 = vsub.s32 %v770_v54, %v3869_v6  ;;  %v3879_v8 = vsub.s32 %v789_v3, %v3869_v6 }
  0xd2   : > { %579 = vadd.xlane.f32.xlu1 %v514_v15  ;;  %577 = vadd.xlane.f32.xlu0 %v513_v42  ;;  %v775_v15 = vadd.s32 4294967288, %v770_v54  ;;  %v782_v42 = vadd.s32 4294967280, %v770_v54  ;;  %5114 = vst [vmem:[#allocation67_spill] sm:$0xff] %v3876_v7  ;;  %5115 = vst [vmem:[#allocation68_spill] sm:$0xff] %v3879_v8 }
  0xd4   : > { %v3882_v24 = vsub.s32 %v775_v15, %v3869_v6 }
  0xd6   : > { %583 = vadd.xlane.f32.xlu1 %v516_v51  ;;  %581 = vadd.xlane.f32.xlu0 %v515_v60  ;;  %v519_v51 = vmul.f32 %v3657_v11, %v3657_v11  ;;  %5116 = vst [vmem:[#allocation69_spill] sm:$0xff] %v3882_v24 }
  0xda   : > { %587 = vadd.xlane.f32.xlu1 %v518_v63  ;;  %585 = vadd.xlane.f32.xlu0 %v517_v5  ;;  %v3885_v63 = vsub.s32 %v782_v42, %v3869_v6  ;;  %v522_v5 = vmul.f32 %v3662_v13, %v3662_v13  ;;  %v523_v13 = vmul.f32 %v3671_v17, %v3671_v17 }
  0xdb   : > { %v390_v60 = vpop.xlane.xlu1 %389  ;;  %v386_v2 = vpop.xlane.xlu0 %385 }
  0xdc   : > { %5117 = vst [vmem:[#allocation70_spill] sm:$0xff] %v3885_v63  ;;  %v774_v3 = vrot.slane %v386_v2, %v3876_v7  ;;  %v786_v42 = vrot.slane %v390_v60, %v3885_v63 }
  0xde   : > { %591 = vadd.xlane.f32.xlu1 %v520_v4  ;;  %589 = vadd.xlane.f32.xlu0 %v519_v51  ;;  %v524_v51 = vmul.f32 %v3669_v16, %v3669_v16 }
  0xdf   : > { %v392_v11 = vpop.xlane.xlu1 %391  ;;  %v388_v54 = vpop.xlane.xlu0 %387 }
  0xe0   : > { %v793_v33 = vrot.slane %v392_v11, %v3879_v8  ;;  %v779_v15 = vrot.slane %v388_v54, %v3882_v24 }
  0xe2   : > { %v781_v4 = vsel %vm780_vm0, %v779_v15, %v774_v3  ;;  %595 = vadd.xlane.f32.xlu1 %v522_v5  ;;  %593 = vadd.xlane.f32.xlu0 %v521_v10  ;;  %v526_v10 = vmul.f32 %v3676_v19, %v3676_v19  ;;  %v525_v5 = vmul.f32 %v3678_v20, %v3678_v20 }
  0xe3   : > { %v788_v2 = vsel %vm787_vm1, %v786_v42, %v781_v4  ;;  %v396_v14 = vpop.xlane.xlu1 %395  ;;  %v394_v11 = vpop.xlane.xlu0 %393 }
  0xe4   : > { %v795_v6 = vsel %vm794_vm2, %v793_v33, %v788_v2  ;;  %v803_v54 = vrot.slane %v396_v14, %v3882_v24  ;;  %v799_v60 = vrot.slane %v394_v11, %v3876_v7 }
  0xe6   : > { %v804_v3 = vsel %vm780_vm0, %v803_v54, %v799_v60  ;;  %599 = vadd.xlane.f32.xlu1 %v524_v51  ;;  %597 = vadd.xlane.f32.xlu0 %v523_v13  ;;  %v528_v13 = vmul.f32 %v3683_v22, %v3683_v22  ;;  %v527_v51 = vmul.f32 %v3685_v23, %v3685_v23 }
  0xe7   : > { %v400_v15 = vpop.xlane.xlu1 %399  ;;  %v398_v42 = vpop.xlane.xlu0 %397 }
  0xe8   : > { %v813_v4 = vrot.slane %v400_v15, %v3879_v8  ;;  %v808_v33 = vrot.slane %v398_v42, %v3885_v63 }
  0xea   : > { %v809_v14 = vsel %vm787_vm1, %v808_v33, %v804_v3  ;;  %603 = vadd.xlane.f32.xlu1 %v526_v10  ;;  %601 = vadd.xlane.f32.xlu0 %v525_v5  ;;  %v530_v10 = vmul.f32 %v3690_v25, %v3690_v25  ;;  %v529_v5 = vmul.f32 %v3692_v26, %v3692_v26 }
  0xeb   : > { %v814_v2 = vsel %vm794_vm2, %v813_v4, %v809_v14  ;;  %v404_v11 = vpop.xlane.xlu1 %403  ;;  %v402_v54 = vpop.xlane.xlu0 %401 }
  0xec   : > { %v1082_v60 = vsel %vm1081_vm3, %v814_v2, %v795_v6  ;;  %v822_v15 = vrot.slane %v404_v11, %v3882_v24  ;;  %v818_v42 = vrot.slane %v402_v54, %v3876_v7 }
  0xee   : > { %v823_v3 = vsel %vm780_vm0, %v822_v15, %v818_v42  ;;  %607 = vadd.xlane.f32.xlu1 %v528_v13  ;;  %605 = vadd.xlane.f32.xlu0 %v527_v51  ;;  %v532_v13 = vmul.f32 %v3697_v28, %v3697_v28  ;;  %v531_v51 = vmul.f32 %v3699_v29, %v3699_v29 }
  0xef   : > { %v408_v33 = vpop.xlane.xlu1 %407  ;;  %v406_v4 = vpop.xlane.xlu0 %405 }
  0xf0   : > { %v832_v14 = vrot.slane %v408_v33, %v3879_v8  ;;  %v827_v6 = vrot.slane %v406_v4, %v3885_v63 }
  0xf2   : > { %v828_v2 = vsel %vm787_vm1, %v827_v6, %v823_v3  ;;  %611 = vadd.xlane.f32.xlu1 %v530_v10  ;;  %609 = vadd.xlane.f32.xlu0 %v529_v5  ;;  %v534_v10 = vmul.f32 %v3704_v31, %v3704_v31  ;;  %v533_v5 = vmul.f32 %v3706_v32, %v3706_v32 }
  0xf3   : > { %v833_v11 = vsel %vm794_vm2, %v832_v14, %v828_v2  ;;  %v412_v54 = vpop.xlane.xlu1 %411  ;;  %v410_v15 = vpop.xlane.xlu0 %409 }
  0xf4   : > { %v1084_v42 = vsel %vm1083_vm4, %v833_v11, %v1082_v60  ;;  %v841_v33 = vrot.slane %v412_v54, %v3882_v24  ;;  %v837_v4 = vrot.slane %v410_v15, %v3876_v7 }
  0xf6   : > { %v842_v3 = vsel %vm780_vm0, %v841_v33, %v837_v4  ;;  %615 = vadd.xlane.f32.xlu1 %v532_v13  ;;  %613 = vadd.xlane.f32.xlu0 %v531_v51  ;;  %v536_v13 = vmul.f32 %v3711_v34, %v3711_v34  ;;  %v535_v51 = vmul.f32 %v3713_v35, %v3713_v35 }
  0xf7   : > { %v416_v6 = vpop.xlane.xlu1 %415  ;;  %v414_v14 = vpop.xlane.xlu0 %413  ;;  %v559_v34 = vmul.f32 %v3797_v21, %v3797_v21  ;;  %v562_v35 = vmul.f32 %v3802_v27, %v3802_v27  ;;  %v564_v21 = vmul.f32 %v3809_v36, %v3809_v36  ;;  %v565_v27 = vmul.f32 %v3818_v48, %v3818_v48  ;;  %v5119_v48 = vld [vmem:[#allocation59_spill] sm:$0xff] }
  0xf8   : > { %v851_v2 = vrot.slane %v416_v6, %v3879_v8  ;;  %v846_v60 = vrot.slane %v414_v14, %v3885_v63  ;;  %v567_v36 = vmul.f32 %v3825_v57, %v3825_v57 }
  0xfa   : > { %v847_v11 = vsel %vm787_vm1, %v846_v60, %v842_v3  ;;  %619 = vadd.xlane.f32.xlu1 %v534_v10  ;;  %617 = vadd.xlane.f32.xlu0 %v533_v5  ;;  %v538_v10 = vmul.f32 %v3718_v37, %v3718_v37  ;;  %v537_v5 = vmul.f32 %v3720_v38, %v3720_v38 }
  0xfb   : > { %v852_v54 = vsel %vm794_vm2, %v851_v2, %v847_v11  ;;  %v420_v15 = vpop.xlane.xlu1 %419  ;;  %v418_v33 = vpop.xlane.xlu0 %417  ;;  %v560_v37 = vmul.f32 %v3795_v18, %v3795_v18  ;;  %v561_v38 = vmul.f32 %v3804_v30, %v3804_v30  ;;  %v563_v18 = vmul.f32 %v3811_v39, %v3811_v39  ;;  %v5118_v39 = vld [vmem:[#allocation56_spill] sm:$0xff] }
  0xfc   : > { %v1086_v4 = vsel %vm1085_vm5, %v852_v54, %v1084_v42  ;;  %v860_v6 = vrot.slane %v420_v15, %v3882_v24  ;;  %v856_v14 = vrot.slane %v418_v33, %v3876_v7  ;;  %v566_v30 = vmul.f32 %v3816_v45, %v3816_v45 }
  0xfd   : > { %v569_v45 = vmul.f32 %v5119_v48, %v5119_v48 }
  0xfe   : > { %v861_v3 = vsel %vm780_vm0, %v860_v6, %v856_v14  ;;  %623 = vadd.xlane.f32.xlu1 %v536_v13  ;;  %621 = vadd.xlane.f32.xlu0 %v535_v51  ;;  %v540_v13 = vmul.f32 %v3725_v40, %v3725_v40  ;;  %v539_v51 = vmul.f32 %v3727_v41, %v3727_v41 }
  0xff   : > { %v424_v60 = vpop.xlane.xlu1 %423  ;;  %v422_v2 = vpop.xlane.xlu0 %421  ;;  %v555_v40 = vmul.f32 %v3783_v1, %v3783_v1  ;;  %v558_v41 = vmul.f32 %v3788_v9, %v3788_v9  ;;  %v5120_v9 = vld [vmem:[#allocation58_spill] sm:$0xff]  ;;  %v5122_v1 = vld [vmem:[#allocation60_spill] sm:$0xff] }
 0x100   : > { %v870_v11 = vrot.slane %v424_v60, %v3879_v8  ;;  %v865_v42 = vrot.slane %v422_v2, %v3885_v63 }
 0x102   : > { %v866_v54 = vsel %vm787_vm1, %v865_v42, %v861_v3  ;;  %627 = vadd.xlane.f32.xlu1 %v538_v10  ;;  %625 = vadd.xlane.f32.xlu0 %v537_v5  ;;  %v542_v10 = vmul.f32 %v3732_v43, %v3732_v43  ;;  %v541_v5 = vmul.f32 %v3734_v44, %v3734_v44 }
 0x103   : > { %v871_v15 = vsel %vm794_vm2, %v870_v11, %v866_v54  ;;  %v428_v33 = vpop.xlane.xlu1 %427  ;;  %v426_v6 = vpop.xlane.xlu0 %425  ;;  %v556_v43 = vmul.f32 %v3781_v0, %v3781_v0  ;;  %v557_v44 = vmul.f32 %v3790_v12, %v3790_v12  ;;  %v568_v0 = vmul.f32 %v5118_v39, %v5118_v39 }
 0x104   : > { %v879_v14 = vrot.slane %v428_v33, %v3882_v24  ;;  %v875_v60 = vrot.slane %v426_v6, %v3876_v7  ;;  %v1088_v2 = vsel %vm1087_vm6, %v871_v15, %v1086_v4  ;;  %v543_v4 = vmul.f32 %v3741_v47, %v3741_v47 }
 0x105   : > { %v554_v47 = vmul.f32 %v3774_v61, %v3774_v61  ;;  %v570_v12 = vmul.f32 %v5120_v9, %v5120_v9 }
 0x106   : > { %v880_v3 = vsel %vm780_vm0, %v879_v14, %v875_v60  ;;  %631 = vadd.xlane.f32.xlu1 %v540_v13  ;;  %629 = vadd.xlane.f32.xlu0 %v539_v51  ;;  %v544_v13 = vmul.f32 %v3739_v46, %v3739_v46  ;;  %v553_v46 = vmul.f32 %v3776_v62, %v3776_v62 }
 0x107   : > { %v432_v42 = vpop.xlane.xlu1 %431  ;;  %v430_v11 = vpop.xlane.xlu0 %429 }
 0x108   : > { %v889_v54 = vrot.slane %v432_v42, %v3879_v8  ;;  %v884_v33 = vrot.slane %v430_v11, %v3885_v63  ;;  %v547_v11 = vmul.f32 %v3755_v53, %v3755_v53 }
 0x10a   : > { %v885_v6 = vsel %vm787_vm1, %v884_v33, %v880_v3  ;;  %635 = vadd.xlane.f32.xlu1 %v542_v10  ;;  %633 = vadd.xlane.f32.xlu0 %v541_v5  ;;  %v545_v3 = vmul.f32 %v3748_v50, %v3748_v50  ;;  %v546_v10 = vmul.f32 %v3746_v49, %v3746_v49  ;;  %v5174_v50 = vld [vmem:[#allocation14_spill] sm:$0xff] }
 0x10b   : > { %v890_v51 = vsel %vm794_vm2, %v889_v54, %v885_v6  ;;  %v3981_v15 = vpop.xlane.xlu1 %435  ;;  %v3983_v14 = vpop.xlane.xlu0 %433  ;;  %v549_v6 = vmul.f32 %v3762_v56, %v3762_v56 }
 0x10c   : > { %v3986_v60 = vsel %vm1089_vm7, %v890_v51, %v1088_v2  ;;  %v548_v2 = vmul.f32 %v3753_v52, %v3753_v52 }
 0x10e   : > { %637 = vadd.xlane.f32.xlu0 %v543_v4  ;;  %639 = vadd.xlane.f32.xlu1 %v544_v13  ;;  %v550_v4 = vmul.f32 %v3760_v55, %v3760_v55  ;;  %v5172_v55 = vld [vmem:[#allocation12_spill] sm:$0xff] }
 0x10f   : > { %v3992_v5 = vpop.xlane.xlu1 %439  ;;  %v3994_v42 = vpop.xlane.xlu0 %437 }
 0x112   : > { %641 = vadd.xlane.f32.xlu0 %v545_v3  ;;  %643 = vadd.xlane.f32.xlu1 %v546_v10  ;;  %v551_v3 = vmul.f32 %v3769_v59, %v3769_v59  ;;  %v552_v10 = vmul.f32 %v3767_v58, %v3767_v58  ;;  %v572_v58 = vmul.f32 %v5122_v1, %v5122_v1  ;;  %v5123_v1 = vld [vmem:[#allocation63_spill] sm:$0xff] }
 0x113   : > { %v4000_v54 = vpop.xlane.xlu1 %443  ;;  %v4002_v33 = vpop.xlane.xlu0 %441 }
 0x114   : > { %v913_v48 = vrot.slane %v4002_v33, %v3876_v7 }
 0x116   : > { %645 = vadd.xlane.f32.xlu0 %v547_v11  ;;  %647 = vadd.xlane.f32.xlu1 %v548_v2 }
 0x117   : > { %v4008_v13 = vpop.xlane.xlu1 %447  ;;  %v4010_v51 = vpop.xlane.xlu0 %445 }
 0x118   : > { %v922_v9 = vrot.slane %v4010_v51, %v3885_v63 }
 0x11a   : > { %649 = vadd.xlane.f32.xlu0 %v549_v6  ;;  %651 = vadd.xlane.f32.xlu1 %v550_v4 }
 0x11b   : > { %v4016_v11 = vpop.xlane.xlu1 %451  ;;  %v4018_v2 = vpop.xlane.xlu0 %449 }
 0x11e   : > { %653 = vadd.xlane.f32.xlu0 %v551_v3  ;;  %655 = vadd.xlane.f32.xlu1 %v552_v10 }
 0x11f   : > { %v4024_v6 = vpop.xlane.xlu1 %455  ;;  %v4026_v4 = vpop.xlane.xlu0 %453 }
 0x122   : > { %657 = vadd.xlane.f32.xlu0 %v553_v46  ;;  %659 = vadd.xlane.f32.xlu1 %v554_v47 }
 0x123   : > { %v4032_v3 = vpop.xlane.xlu1 %459  ;;  %v4034_v10 = vpop.xlane.xlu0 %457 }
 0x126   : > { %661 = vadd.xlane.f32.xlu0 %v555_v40  ;;  %663 = vadd.xlane.f32.xlu1 %v556_v43 }
 0x127   : > { %v4040_v46 = vpop.xlane.xlu1 %463  ;;  %v4042_v47 = vpop.xlane.xlu0 %461 }
 0x12a   : > { %665 = vadd.xlane.f32.xlu0 %v557_v44  ;;  %667 = vadd.xlane.f32.xlu1 %v558_v41 }
 0x12b   : > { %v4048_v40 = vpop.xlane.xlu1 %467  ;;  %v4050_v43 = vpop.xlane.xlu0 %465 }
 0x12e   : > { %669 = vadd.xlane.f32.xlu0 %v559_v34  ;;  %671 = vadd.xlane.f32.xlu1 %v560_v37 }
 0x12f   : > { %v4056_v44 = vpop.xlane.xlu1 %471  ;;  %v4058_v41 = vpop.xlane.xlu0 %469 }
 0x132   : > { %673 = vadd.xlane.f32.xlu0 %v561_v38  ;;  %675 = vadd.xlane.f32.xlu1 %v562_v35 }
 0x133   : > { %v4064_v34 = vpop.xlane.xlu1 %475  ;;  %v4066_v37 = vpop.xlane.xlu0 %473 }
 0x136   : > { %677 = vadd.xlane.f32.xlu0 %v563_v18  ;;  %679 = vadd.xlane.f32.xlu1 %v564_v21 }
 0x137   : > { %v4072_v38 = vpop.xlane.xlu1 %479  ;;  %v4074_v35 = vpop.xlane.xlu0 %477 }
 0x13a   : > { %681 = vadd.xlane.f32.xlu0 %v565_v27  ;;  %683 = vadd.xlane.f32.xlu1 %v566_v30  ;;  %v898_v27 = vrot.slane %v3981_v15, %v3882_v24  ;;  %v894_v30 = vrot.slane %v3983_v14, %v3876_v7  ;;  %v5121_v15 = vld [vmem:[#allocation61_spill] sm:$0xff] }
 0x13b   : > { %v4080_v18 = vpop.xlane.xlu1 %483  ;;  %v4082_v21 = vpop.xlane.xlu0 %481  ;;  %v571_v14 = vmul.f32 %v5121_v15, %v5121_v15  ;;  %v936_v15 = vrot.slane %v4016_v11, %v3882_v24 }
 0x13c   : > { %v899_v52 = vsel %vm780_vm0, %v898_v27, %v894_v30  ;;  %v573_v27 = vmul.f32 %v5123_v1, %v5123_v1  ;;  %v5124_v30 = vld [vmem:[#allocation62_spill] sm:$0xff] }
 0x13e   : > { %685 = vadd.xlane.f32.xlu0 %v567_v36  ;;  %687 = vadd.xlane.f32.xlu1 %v568_v0  ;;  %v903_v36 = vrot.slane %v3994_v42, %v3885_v63  ;;  %v917_v0 = vrot.slane %v4000_v54, %v3882_v24  ;;  %v908_v42 = vrot.slane %v3992_v5, %v3879_v8 }
 0x13f   : > { %v4092_v57 = vpop.xlane.xlu1 %487  ;;  %v4094_v39 = vpop.xlane.xlu0 %485  ;;  %v574_v5 = vmul.f32 %v5124_v30, %v5124_v30 }
 0x140   : > { %v904_v33 = vsel %vm787_vm1, %v903_v36, %v899_v52  ;;  %v932_v52 = vrot.slane %v4018_v2, %v3876_v7  ;;  %v955_v36 = vrot.slane %v4032_v3, %v3882_v24  ;;  %v960_v2 = vrot.slane %v4042_v47, %v3885_v63 }
 0x141   : > { %v970_v47 = vrot.slane %v4050_v43, %v3876_v7  ;;  %v993_v43 = vrot.slane %v4064_v34, %v3882_v24  ;;  %v1017_v34 = vrot.slane %v4094_v39, %v3885_v63 }
 0x142   : > { %689 = vadd.xlane.f32.xlu0 %v569_v45  ;;  %691 = vadd.xlane.f32.xlu1 %v570_v12  ;;  %v918_v45 = vsel %vm780_vm0, %v917_v0, %v913_v48  ;;  %v927_v12 = vrot.slane %v4008_v13, %v3879_v8  ;;  %v951_v0 = vrot.slane %v4034_v10, %v3876_v7 }
 0x143   : > { %v4111_v54 = vpop.xlane.xlu1 %491  ;;  %v4113_v61 = vpop.xlane.xlu0 %489  ;;  %v923_v51 = vsel %vm787_vm1, %v922_v9, %v918_v45  ;;  %v909_v9 = vsel %vm794_vm2, %v908_v42, %v904_v33  ;;  %v5126_v33 = vld [vmem:[#allocation64_spill] sm:$0xff]  ;;  %v937_v3 = vsel %vm780_vm0, %v936_v15, %v932_v52  ;;  %v974_v10 = vrot.slane %v4048_v40, %v3882_v24 }
 0x144   : > { %v928_v11 = vsel %vm794_vm2, %v927_v12, %v923_v51  ;;  %v576_v45 = vmul.f32 %v5126_v33, %v5126_v33  ;;  %v965_v15 = vrot.slane %v4040_v46, %v3879_v8  ;;  %v979_v40 = vrot.slane %v4058_v41, %v3885_v63 }
 0x145   : > { %v1008_v46 = vrot.slane %v4082_v21, %v3876_v7  ;;  %v975_v41 = vsel %vm780_vm0, %v974_v10, %v970_v47  ;;  %v984_v21 = vrot.slane %v4056_v44, %v3879_v8 }
 0x146   : > { %693 = vadd.xlane.f32.xlu0 %v571_v14  ;;  %695 = vadd.xlane.f32.xlu1 %v572_v58  ;;  %v941_v58 = vrot.slane %v4026_v4, %v3885_v63  ;;  %v5125_v14 = vld [vmem:[#allocation65_spill] sm:$0xff]  ;;  %v1092_v4 = vsel %vm1091_vm8, %v909_v9, %v3986_v60  ;;  %v956_v60 = vsel %vm780_vm0, %v955_v36, %v951_v0 }
 0x147   : > { %v4128_v48 = vpop.xlane.xlu1 %495  ;;  %v494_v13 = vpop.xlane.xlu0 %493  ;;  %v575_v42 = vmul.f32 %v5125_v14, %v5125_v14  ;;  %v961_v52 = vsel %vm787_vm1, %v960_v2, %v956_v60  ;;  %v989_v9 = vrot.slane %v4066_v37, %v3876_v7  ;;  %v1031_v37 = vrot.slane %v4111_v54, %v3882_v24 }
 0x148   : > { %v942_v33 = vsel %vm787_vm1, %v941_v58, %v937_v3  ;;  %v1012_v58 = vrot.slane %v4080_v18, %v3882_v24  ;;  %v1003_v54 = vrot.slane %v4072_v38, %v3879_v8  ;;  %v966_v10 = vsel %vm794_vm2, %v965_v15, %v961_v52 }
 0x149   : > { %v994_v39 = vsel %vm780_vm0, %v993_v43, %v989_v9  ;;  %v1041_v38 = vrot.slane %v4128_v48, %v3879_v8 }
 0x14a   : > { %697 = vadd.xlane.f32.xlu0 %v573_v27  ;;  %699 = vadd.xlane.f32.xlu1 %v574_v5  ;;  %v1094_v27 = vsel %vm1093_vm9, %v928_v11, %v1092_v4  ;;  %v946_v5 = vrot.slane %v4024_v6, %v3879_v8  ;;  %v998_v6 = vrot.slane %v4074_v35, %v3885_v63 }
 0x14b   : > { %v500_v12 = vpop.xlane.xlu1 %499  ;;  %v498_v51 = vpop.xlane.xlu0 %497  ;;  %v1105_v36 = vsel %vm1104_vm10, %v1094_v27, 0.0  ;;  %v1027_v35 = vrot.slane %v4113_v61, %v3876_v7  ;;  %v1036_v11 = vrot.slane %v494_v13, %v3885_v63  ;;  %v1013_v44 = vsel %vm780_vm0, %v1012_v58, %v1008_v46 }
 0x14c   : > { %v1050_v2 = vrot.slane %v500_v12, %v3882_v24  ;;  %v947_v4 = vsel %vm794_vm2, %v946_v5, %v942_v33  ;;  %v999_v3 = vsel %vm787_vm1, %v998_v6, %v994_v39  ;;  %v1022_v13 = vrot.slane %v4092_v57, %v3879_v8 }
 0x14d   : > { %v1018_v47 = vsel %vm787_vm1, %v1017_v34, %v1013_v44  ;;  %v1032_v12 = vsel %vm780_vm0, %v1031_v37, %v1027_v35  ;;  %v1095_v48 = vsel %vm1081_vm3, %v966_v10, %v947_v4 }
 0x14e   : > { %701 = vadd.xlane.f32.xlu0 %v575_v42  ;;  %703 = vadd.xlane.f32.xlu1 %v576_v45  ;;  %v1046_v42 = vrot.slane %v498_v51, %v3876_v7  ;;  %v980_v45 = vsel %vm787_vm1, %v979_v40, %v975_v41  ;;  %v1037_v5 = vsel %vm787_vm1, %v1036_v11, %v1032_v12 }
 0x14f   : > { %v504_v0 = vpop.xlane.xlu1 %503  ;;  %v502_v18 = vpop.xlane.xlu0 %501  ;;  %v985_v33 = vsel %vm794_vm2, %v984_v21, %v980_v45  ;;  %v1004_v40 = vsel %vm794_vm2, %v1003_v54, %v999_v3  ;;  %v1023_v9 = vsel %vm794_vm2, %v1022_v13, %v1018_v47  ;;  %v1042_v58 = vsel %vm794_vm2, %v1041_v38, %v1037_v5 }
 0x150   : > { %v1055_v61 = vrot.slane %v502_v18, %v3885_v63  ;;  %v1051_v60 = vsel %vm780_vm0, %v1050_v2, %v1046_v42  ;;  %v1060_v57 = vrot.slane %v504_v0, %v3879_v8  ;;  %v1096_v6 = vsel %vm1083_vm4, %v985_v33, %v1095_v48 }
 0x151   : > { %v1097_v41 = vsel %vm1085_vm5, %v1004_v40, %v1096_v6 }
 0x152   : > { %1106 = vadd.xlane.f32.xlu0 %v1105_v36  ;;  %v1056_v15 = vsel %vm787_vm1, %v1055_v61, %v1051_v60  ;;  %v1098_v18 = vsel %vm1087_vm6, %v1023_v9, %v1097_v41 }
 0x153   : > { %v508_v51 = vpop.xlane.xlu1 %507  ;;  %v506_v27 = vpop.xlane.xlu0 %505  ;;  %v1061_v35 = vsel %vm794_vm2, %v1060_v57, %v1056_v15  ;;  %v1099_v11 = vsel %vm1089_vm7, %v1042_v58, %v1098_v18 }
 0x154   : > { %v1069_v52 = vrot.slane %v508_v51, %v3882_v24  ;;  %v1065_v43 = vrot.slane %v506_v27, %v3876_v7  ;;  %v1100_v39 = vsel %vm1091_vm8, %v1061_v35, %v1099_v11 }
 0x156   : > { %v1070_v0 = vsel %vm780_vm0, %v1069_v52, %v1065_v43 }
 0x157   : > { %v512_v46 = vpop.xlane.xlu1 %511  ;;  %v510_v36 = vpop.xlane.xlu0 %509 }
 0x158   : > { %v1079_v34 = vrot.slane %v512_v46, %v3879_v8  ;;  %v1074_v37 = vrot.slane %v510_v36, %v3885_v63 }
 0x15a   : > { %v1075_v21 = vsel %vm787_vm1, %v1074_v37, %v1070_v0 }
 0x15b   : > { %v580_v2 = vpop.xlane.xlu1 %579  ;;  %v578_v42 = vpop.xlane.xlu0 %577  ;;  %v1080_v45 = vsel %vm794_vm2, %v1079_v34, %v1075_v21 }
 0x15c   : > { %v1101_v54 = vsel %vm1093_vm9, %v1080_v45, %v1100_v39  ;;  %v1182_v6 = vrot.slane %v580_v2, %v3882_v24  ;;  %v1178_v58 = vrot.slane %v578_v42, %v3876_v7 }
 0x15d   : > { %v1108_v61 = vsel %vm1104_vm10, %v1101_v54, 0.0 }
 0x15e   : > { %1109 = vadd.xlane.f32.xlu1 %v1108_v61  ;;  %v1183_v0 = vsel %vm780_vm0, %v1182_v6, %v1178_v58 }
 0x15f   : > { %v584_v4 = vpop.xlane.xlu1 %583  ;;  %v582_v3 = vpop.xlane.xlu0 %581 }
 0x160   : > { %v1187_v41 = vrot.slane %v582_v3, %v3885_v63  ;;  %v1192_v42 = vrot.slane %v584_v4, %v3879_v8 }
 0x162   : > { %v1188_v45 = vsel %vm787_vm1, %v1187_v41, %v1183_v0 }
 0x163   : > { %v588_v44 = vpop.xlane.xlu1 %587  ;;  %v586_v13 = vpop.xlane.xlu0 %585 }
 0x164   : > { %v1201_v34 = vrot.slane %v588_v44, %v3882_v24  ;;  %v1197_v37 = vrot.slane %v586_v13, %v3876_v7 }
 0x166   : > { %v1202_v39 = vsel %vm780_vm0, %v1201_v34, %v1197_v37 }
 0x167   : > { %v592_v10 = vpop.xlane.xlu1 %591  ;;  %v590_v47 = vpop.xlane.xlu0 %589 }
 0x168   : > { %v1206_v35 = vrot.slane %v590_v47, %v3885_v63  ;;  %v1211_v54 = vrot.slane %v592_v10, %v3879_v8 }
 0x16a   : > { %v1207_v13 = vsel %vm787_vm1, %v1206_v35, %v1202_v39 }
 0x16b   : > { %v596_v12 = vpop.xlane.xlu1 %595  ;;  %v594_v38 = vpop.xlane.xlu0 %593  ;;  %v1212_v35 = vsel %vm794_vm2, %v1211_v54, %v1207_v13 }
 0x16c   : > { %v1220_v18 = vrot.slane %v596_v12, %v3882_v24  ;;  %v1216_v21 = vrot.slane %v594_v38, %v3876_v7 }
 0x16e   : > { %v1221_v38 = vsel %vm780_vm0, %v1220_v18, %v1216_v21 }
 0x16f   : > { %v600_v51 = vpop.xlane.xlu1 %599  ;;  %v598_v27 = vpop.xlane.xlu0 %597 }
 0x170   : > { %v1225_v61 = vrot.slane %v598_v27, %v3885_v63 }
 0x173   : > { %v604_v33 = vpop.xlane.xlu1 %603  ;;  %v602_v5 = vpop.xlane.xlu0 %601 }
 0x174   : > { %v1239_v3 = vrot.slane %v604_v33, %v3882_v24  ;;  %v1235_v44 = vrot.slane %v602_v5, %v3876_v7  ;;  %v1230_v5 = vrot.slane %v600_v51, %v3879_v8 }
 0x176   : > { %v1240_v34 = vsel %vm780_vm0, %v1239_v3, %v1235_v44 }
 0x177   : > { %v608_v60 = vpop.xlane.xlu1 %607  ;;  %v606_v57 = vpop.xlane.xlu0 %605 }
 0x178   : > { %v1244_v47 = vrot.slane %v606_v57, %v3885_v63 }
 0x17a   : > { %v1245_v37 = vsel %vm787_vm1, %v1244_v47, %v1240_v34 }
 0x17b   : > { %v612_v40 = vpop.xlane.xlu1 %611  ;;  %v610_v15 = vpop.xlane.xlu0 %609 }
 0x17c   : > { %v1258_v12 = vrot.slane %v612_v40, %v3882_v24  ;;  %v1254_v4 = vrot.slane %v610_v15, %v3876_v7  ;;  %v1226_v15 = vsel %vm787_vm1, %v1225_v61, %v1221_v38 }
 0x17e   : > { %v1259_v51 = vsel %vm780_vm0, %v1258_v12, %v1254_v4 }
 0x17f   : > { %v4223_v52 = vpop.xlane.xlu1 %615  ;;  %v614_v43 = vpop.xlane.xlu0 %613 }
 0x180   : > { %v1263_v6 = vrot.slane %v614_v43, %v3885_v63  ;;  %v1249_v43 = vrot.slane %v608_v60, %v3879_v8 }
 0x182   : > { %v1264_v0 = vsel %vm787_vm1, %v1263_v6, %v1259_v51 }
 0x183   : > { %v620_v48 = vpop.xlane.xlu1 %619  ;;  %v618_v9 = vpop.xlane.xlu0 %617 }
 0x184   : > { %v1277_v10 = vrot.slane %v620_v48, %v3882_v24  ;;  %v1273_v27 = vrot.slane %v618_v9, %v3876_v7  ;;  %v1193_v9 = vsel %vm794_vm2, %v1192_v42, %v1188_v45 }
 0x186   : > { %v1278_v18 = vsel %vm780_vm0, %v1277_v10, %v1273_v27 }
 0x187   : > { %v624_v46 = vpop.xlane.xlu1 %623  ;;  %v622_v36 = vpop.xlane.xlu0 %621 }
 0x188   : > { %v1282_v41 = vrot.slane %v622_v36, %v3885_v63  ;;  %v1268_v36 = vrot.slane %v4223_v52, %v3879_v8  ;;  %v1287_v21 = vrot.slane %v624_v46, %v3879_v8  ;;  %v1250_v52 = vsel %vm794_vm2, %v1249_v43, %v1245_v37 }
 0x189   : > { %v1479_v46 = vsel %vm1081_vm3, %v1212_v35, %v1193_v9 }
 0x18a   : > { %v1283_v42 = vsel %vm787_vm1, %v1282_v41, %v1278_v18  ;;  %v1269_v44 = vsel %vm794_vm2, %v1268_v36, %v1264_v0 }
 0x18b   : > { %v628_v11 = vpop.xlane.xlu1 %627  ;;  %v626_v2 = vpop.xlane.xlu0 %625  ;;  %v1288_v47 = vsel %vm794_vm2, %v1287_v21, %v1283_v42 }
 0x18c   : > { %v1296_v57 = vrot.slane %v628_v11, %v3882_v24  ;;  %v1292_v40 = vrot.slane %v626_v2, %v3876_v7  ;;  %v1231_v2 = vsel %vm794_vm2, %v1230_v5, %v1226_v15 }
 0x18d   : > { %v1480_v13 = vsel %vm1083_vm4, %v1231_v2, %v1479_v46 }
 0x18e   : > { %v1297_v45 = vsel %vm780_vm0, %v1296_v57, %v1292_v40  ;;  %v1481_v38 = vsel %vm1085_vm5, %v1250_v52, %v1480_v13 }
 0x18f   : > { %v632_v58 = vpop.xlane.xlu1 %631  ;;  %v630_v33 = vpop.xlane.xlu0 %629 }
 0x190   : > { %v1301_v48 = vrot.slane %v630_v33, %v3885_v63  ;;  %v1306_v39 = vrot.slane %v632_v58, %v3879_v8  ;;  %v1482_v33 = vsel %vm1087_vm6, %v1269_v44, %v1481_v38 }
 0x191   : > { %v1483_v41 = vsel %vm1089_vm7, %v1288_v47, %v1482_v33 }
 0x192   : > { %v1302_v54 = vsel %vm787_vm1, %v1301_v48, %v1297_v45 }
 0x193   : > { %v636_v60 = vpop.xlane.xlu1 %635  ;;  %v634_v11 = vpop.xlane.xlu0 %633  ;;  %v1307_v27 = vsel %vm794_vm2, %v1306_v39, %v1302_v54 }
 0x194   : > { %v1315_v61 = vrot.slane %v636_v60, %v3882_v24  ;;  %v1311_v3 = vrot.slane %v634_v11, %v3876_v7  ;;  %v1484_v34 = vsel %vm1091_vm8, %v1307_v27, %v1483_v41 }
 0x196   : > { %v1316_v58 = vsel %vm780_vm0, %v1315_v61, %v1311_v3 }
 0x197   : > { %v638_v12 = vpop.xlane.xlu0 %637  ;;  %v640_v4 = vpop.xlane.xlu1 %639 }
 0x198   : > { %v1320_v6 = vrot.slane %v638_v12, %v3885_v63  ;;  %v1325_v10 = vrot.slane %v640_v4, %v3879_v8 }
 0x19a   : > { %v1321_v5 = vsel %vm787_vm1, %v1320_v6, %v1316_v58 }
 0x19b   : > { %v642_v57 = vpop.xlane.xlu0 %641  ;;  %v644_v40 = vpop.xlane.xlu1 %643  ;;  %v1326_v15 = vsel %vm794_vm2, %v1325_v10, %v1321_v5 }
 0x19c   : > { %v1485_v43 = vsel %vm1093_vm9, %v1326_v15, %v1484_v34  ;;  %v1330_v13 = vrot.slane %v642_v57, %v3876_v7  ;;  %v1334_v47 = vrot.slane %v644_v40, %v3882_v24 }
 0x19d   : > { %v1495_v48 = vsel %vm1104_vm10, %v1485_v43, 0.0 }
 0x19e   : > { %1496 = vadd.xlane.f32.xlu0 %v1495_v48  ;;  %v1335_v58 = vsel %vm780_vm0, %v1334_v47, %v1330_v13 }
 0x19f   : > { %v646_v9 = vpop.xlane.xlu0 %645  ;;  %v648_v37 = vpop.xlane.xlu1 %647 }
 0x1a0   : > { %v1339_v38 = vrot.slane %v646_v9, %v3885_v63  ;;  %v1344_v15 = vrot.slane %v648_v37, %v3879_v8 }
 0x1a2   : > { %v1340_v40 = vsel %vm787_vm1, %v1339_v38, %v1335_v58 }
 0x1a3   : > { %v650_v51 = vpop.xlane.xlu0 %649  ;;  %v652_v36 = vpop.xlane.xlu1 %651 }
 0x1a4   : > { %v1349_v6 = vrot.slane %v650_v51, %v3876_v7  ;;  %v1353_v10 = vrot.slane %v652_v36, %v3882_v24 }
 0x1a6   : > { %v1354_v34 = vsel %vm780_vm0, %v1353_v10, %v1349_v6 }
 0x1a7   : > { %v654_v35 = vpop.xlane.xlu0 %653  ;;  %v656_v0 = vpop.xlane.xlu1 %655 }
 0x1a8   : > { %v1358_v27 = vrot.slane %v654_v35, %v3885_v63  ;;  %v1363_v43 = vrot.slane %v656_v0, %v3879_v8 }
 0x1aa   : > { %v1359_v36 = vsel %vm787_vm1, %v1358_v27, %v1354_v34 }
 0x1ab   : > { %v658_v18 = vpop.xlane.xlu0 %657  ;;  %v660_v21 = vpop.xlane.xlu1 %659  ;;  %v1364_v27 = vsel %vm794_vm2, %v1363_v43, %v1359_v36 }
 0x1ac   : > { %v1368_v33 = vrot.slane %v658_v18, %v3876_v7  ;;  %v1372_v5 = vrot.slane %v660_v21, %v3882_v24 }
 0x1ae   : > { %v1373_v37 = vsel %vm780_vm0, %v1372_v5, %v1368_v33 }
 0x1af   : > { %v662_v60 = vpop.xlane.xlu0 %661  ;;  %v664_v11 = vpop.xlane.xlu1 %663 }
 0x1b0   : > { %v1377_v48 = vrot.slane %v662_v60, %v3885_v63 }
 0x1b3   : > { %v666_v2 = vpop.xlane.xlu0 %665  ;;  %v668_v42 = vpop.xlane.xlu1 %667 }
 0x1b4   : > { %v1387_v9 = vrot.slane %v666_v2, %v3876_v7  ;;  %v1391_v51 = vrot.slane %v668_v42, %v3882_v24  ;;  %v1382_v42 = vrot.slane %v664_v11, %v3879_v8 }
 0x1b6   : > { %v1392_v6 = vsel %vm780_vm0, %v1391_v51, %v1387_v9 }
 0x1b7   : > { %v670_v45 = vpop.xlane.xlu0 %669  ;;  %v672_v39 = vpop.xlane.xlu1 %671 }
 0x1b8   : > { %v1396_v35 = vrot.slane %v670_v45, %v3885_v63 }
 0x1ba   : > { %v1397_v10 = vsel %vm787_vm1, %v1396_v35, %v1392_v6 }
 0x1bb   : > { %v674_v52 = vpop.xlane.xlu0 %673  ;;  %v676_v54 = vpop.xlane.xlu1 %675 }
 0x1bc   : > { %v1406_v18 = vrot.slane %v674_v52, %v3876_v7  ;;  %v1410_v21 = vrot.slane %v676_v54, %v3882_v24  ;;  %v1378_v54 = vsel %vm787_vm1, %v1377_v48, %v1373_v37 }
 0x1be   : > { %v1411_v11 = vsel %vm780_vm0, %v1410_v21, %v1406_v18 }
 0x1bf   : > { %v678_v61 = vpop.xlane.xlu0 %677  ;;  %v680_v3 = vpop.xlane.xlu1 %679 }
 0x1c0   : > { %v1415_v13 = vrot.slane %v678_v61, %v3885_v63  ;;  %v1401_v61 = vrot.slane %v672_v39, %v3879_v8 }
 0x1c2   : > { %v1416_v58 = vsel %vm787_vm1, %v1415_v13, %v1411_v11 }
 0x1c3   : > { %v682_v46 = vpop.xlane.xlu0 %681  ;;  %v684_v44 = vpop.xlane.xlu1 %683 }
 0x1c4   : > { %v1425_v0 = vrot.slane %v682_v46, %v3876_v7  ;;  %v1429_v60 = vrot.slane %v684_v44, %v3882_v24  ;;  %v1345_v44 = vsel %vm794_vm2, %v1344_v15, %v1340_v40 }
 0x1c6   : > { %v1430_v33 = vsel %vm780_vm0, %v1429_v60, %v1425_v0 }
 0x1c7   : > { %v686_v12 = vpop.xlane.xlu0 %685  ;;  %v688_v4 = vpop.xlane.xlu1 %687 }
 0x1c8   : > { %v1434_v38 = vrot.slane %v686_v12, %v3885_v63  ;;  %v1420_v12 = vrot.slane %v680_v3, %v3879_v8  ;;  %v1439_v5 = vrot.slane %v688_v4, %v3879_v8  ;;  %v1402_v3 = vsel %vm794_vm2, %v1401_v61, %v1397_v10 }
 0x1c9   : > { %v1486_v4 = vsel %vm1081_vm3, %v1364_v27, %v1345_v44 }
 0x1ca   : > { %v1435_v40 = vsel %vm787_vm1, %v1434_v38, %v1430_v33  ;;  %v1421_v51 = vsel %vm794_vm2, %v1420_v12, %v1416_v58  ;;  %v1515_v33 = vld [vmem:[#allocation5] sm:$0xff] }
 0x1cb   : > { %v690_v41 = vpop.xlane.xlu0 %689  ;;  %v692_v57 = vpop.xlane.xlu1 %691  ;;  %v1440_v35 = vsel %vm794_vm2, %v1439_v5, %v1435_v40  ;;  %v5127_v5 = vld [vmem:[#allocation66_spill] sm:$0xff] }
 0x1cc   : > { %v1444_v45 = vrot.slane %v690_v41, %v3876_v7  ;;  %v1448_v52 = vrot.slane %v692_v57, %v3882_v24  ;;  %v1383_v57 = vsel %vm794_vm2, %v1382_v42, %v1378_v54 }
 0x1cd   : > { %v1487_v36 = vsel %vm1083_vm4, %v1383_v57, %v1486_v4  ;;  %v4381_v4 = vsub.s32 4, %v5127_v5 }
 0x1ce   : > { %v1449_v15 = vsel %vm780_vm0, %v1448_v52, %v1444_v45  ;;  %v1488_v37 = vsel %vm1085_vm5, %v1402_v3, %v1487_v36  ;;  %v4371_v3 = vsub.s32 2, %v5127_v5  ;;  %v4386_v36 = vsub.s32 5, %v5127_v5 }
 0x1cf   : > { %v694_v47 = vpop.xlane.xlu0 %693  ;;  %v696_v2 = vpop.xlane.xlu1 %695 }
 0x1d0   : > { %v1453_v46 = vrot.slane %v694_v47, %v3885_v63  ;;  %v1458_v34 = vrot.slane %v696_v2, %v3879_v8  ;;  %v1489_v47 = vsel %vm1087_vm6, %v1421_v51, %v1488_v37 }
 0x1d1   : > { %v1490_v38 = vsel %vm1089_vm7, %v1440_v35, %v1489_v47 }
 0x1d2   : > { %v1454_v43 = vsel %vm787_vm1, %v1453_v46, %v1449_v15  ;;  %v4366_v15 = vsub.s32 1, %v5127_v5 }
 0x1d3   : > { %v698_v41 = vpop.xlane.xlu0 %697  ;;  %v700_v39 = vpop.xlane.xlu1 %699  ;;  %v1459_v13 = vsel %vm794_vm2, %v1458_v34, %v1454_v43 }
 0x1d4   : > { %v1463_v48 = vrot.slane %v698_v41, %v3876_v7  ;;  %v1467_v9 = vrot.slane %v700_v39, %v3882_v24  ;;  %v1491_v52 = vsel %vm1091_vm8, %v1459_v13, %v1490_v38  ;;  %v4359_v41 = vsub.s32 0, %v5127_v5 }
 0x1d6   : > { %v1468_v2 = vsel %vm780_vm0, %v1467_v9, %v1463_v48  ;;  %v4376_v48 = vsub.s32 3, %v5127_v5 }
 0x1d7   : > { %v702_v18 = vpop.xlane.xlu0 %701  ;;  %v704_v21 = vpop.xlane.xlu1 %703 }
 0x1d8   : > { %v1472_v0 = vrot.slane %v702_v18, %v3885_v63  ;;  %v1477_v60 = vrot.slane %v704_v21, %v3879_v8 }
 0x1da   : > { %v1473_v42 = vsel %vm787_vm1, %v1472_v0, %v1468_v2 }
 0x1db   : > { %v1478_v45 = vsel %vm794_vm2, %v1477_v60, %v1473_v42  ;;  %v1107_v61 = vpop.xlane.xlu0 %1106  ;;  %v4395_v60 = vsub.s32 6, %v5127_v5 }
 0x1dc   : > { %v1492_v54 = vsel %vm1093_vm9, %v1478_v45, %v1491_v52  ;;  %v4354_v46 = vmul.f32 0.00024414063, %v1107_v61  ;;  %v4400_v45 = vsub.s32 7, %v5127_v5 }
 0x1dd   : > { %v1498_v6 = vsel %vm1104_vm10, %v1492_v54, 0.0  ;;  %v1516_v54 = vld [vmem:[#allocation5 + $0x8] sm:$0xff] }
 0x1de   : > { %1499 = vadd.xlane.f32.xlu1 %v1498_v6  ;;  %v1505_v10 = vmul.f32 %v4354_v46, %v4354_v46 }
 0x1e7   : > { %v1110_v35 = vpop.xlane.xlu1 %1109 }
 0x1e8   : > { %v4388_v18 = vmul.f32 0.00024414063, %v1110_v35 }
 0x1ea   : > { %v1506_v13 = vmul.f32 %v4388_v18, %v4388_v18 }
 0x227   : > { %v1497_v44 = vpop.xlane.xlu0 %1496 }
 0x228   : > { %v1503_v11 = vmul.f32 0.00024414063, %v1497_v44 }
 0x22a   : > { %v1507_v12 = vsub.f32 %v1503_v11, %v1505_v10 }
 0x22c   : > { %v1509_v27 = vmax.f32 %v1507_v12, 0.0 }
 0x22e   : > { %v1511_v58 = vadd.f32 1e-05, %v1509_v27 }
 0x230   : > { %3298 = vrsqrt.f32 %v1511_v58 }
 0x23d   : > { %v3299_v39 = vpop.eup %3298 }
 0x23e   : > { %v4361_v57 = vmul.f32 %v3299_v39, %v1515_v33 }
 0x240   : > { %v1528_v40 = vrot.slane %v4361_v57, %v4359_v41  ;;  %v1547_v34 = vrot.slane %v4361_v57, %v4366_v15  ;;  %v1566_v43 = vrot.slane %v4361_v57, %v4371_v3  ;;  %v1585_v9 = vrot.slane %v4361_v57, %v4376_v48 }
 0x241   : > { %v1604_v51 = vrot.slane %v4361_v57, %v4381_v4  ;;  %v1623_v21 = vrot.slane %v4361_v57, %v4386_v36  ;;  %v1642_v42 = vrot.slane %v4361_v57, %v4395_v60  ;;  %v1661_v52 = vrot.slane %v4361_v57, %v4400_v45 }
 0x242   : > { %1534 = vbcast.lane.b32.xlu1 %v1528_v40, 264  ;;  %1530 = vbcast.lane.b32.xlu0 %v1528_v40, 256 }
 0x246   : > { %1538 = vbcast.lane.b32.xlu1 %v1528_v40, 272  ;;  %1549 = vbcast.lane.b32.xlu0 %v1547_v34, 256 }
 0x24a   : > { %1542 = vbcast.lane.b32.xlu1 %v1528_v40, 280  ;;  %1557 = vbcast.lane.b32.xlu0 %v1547_v34, 272 }
 0x24e   : > { %1553 = vbcast.lane.b32.xlu1 %v1547_v34, 264  ;;  %1568 = vbcast.lane.b32.xlu0 %v1566_v43, 256 }
 0x252   : > { %1561 = vbcast.lane.b32.xlu1 %v1547_v34, 280  ;;  %1576 = vbcast.lane.b32.xlu0 %v1566_v43, 272 }
 0x256   : > { %1572 = vbcast.lane.b32.xlu1 %v1566_v43, 264  ;;  %1587 = vbcast.lane.b32.xlu0 %v1585_v9, 256 }
 0x25a   : > { %1580 = vbcast.lane.b32.xlu1 %v1566_v43, 280  ;;  %1595 = vbcast.lane.b32.xlu0 %v1585_v9, 272 }
 0x25e   : > { %1591 = vbcast.lane.b32.xlu1 %v1585_v9, 264  ;;  %1606 = vbcast.lane.b32.xlu0 %v1604_v51, 256 }
 0x262   : > { %1599 = vbcast.lane.b32.xlu1 %v1585_v9, 280  ;;  %1614 = vbcast.lane.b32.xlu0 %v1604_v51, 272  ;;  %v1521_v9 = vmul.f32 %v4361_v57, %v4354_v46 }
 0x266   : > { %1610 = vbcast.lane.b32.xlu1 %v1604_v51, 264  ;;  %1625 = vbcast.lane.b32.xlu0 %v1623_v21, 256 }
 0x267   : > { %v1500_v37 = vpop.xlane.xlu1 %1499 }
 0x268   : > { %v1504_v0 = vmul.f32 0.00024414063, %v1500_v37 }
 0x26a   : > { %v1508_v47 = vsub.f32 %v1504_v0, %v1506_v13  ;;  %1618 = vbcast.lane.b32.xlu1 %v1604_v51, 280  ;;  %1633 = vbcast.lane.b32.xlu0 %v1623_v21, 272  ;;  %v1519_v51 = vld [vmem:[#allocation7] sm:$0xff] }
 0x26b   : > { %v4436_v37 = vsub.f32 %v1519_v51, %v1521_v9 }
 0x26c   : > { %v1510_v2 = vmax.f32 %v1508_v47, 0.0 }
 0x26d   : > { %v1896_v47 = vrot.slane %v4436_v37, %v4359_v41  ;;  %v1991_v24 = vrot.slane %v4436_v37, %v4386_v36  ;;  %v2010_v1 = vrot.slane %v4436_v37, %v4395_v60 }
 0x26e   : > { %v1512_v38 = vadd.f32 1e-05, %v1510_v2  ;;  %1629 = vbcast.lane.b32.xlu1 %v1623_v21, 264  ;;  %1644 = vbcast.lane.b32.xlu0 %v1642_v42, 256 }
 0x270   : > { %3300 = vrsqrt.f32 %v1512_v38  ;;  %v1915_v38 = vrot.slane %v4436_v37, %v4366_v15 }
 0x272   : > { %1637 = vbcast.lane.b32.xlu1 %v1623_v21, 280  ;;  %1652 = vbcast.lane.b32.xlu0 %v1642_v42, 272 }
 0x276   : > { %1648 = vbcast.lane.b32.xlu1 %v1642_v42, 264  ;;  %1663 = vbcast.lane.b32.xlu0 %v1661_v52, 256 }
 0x27a   : > { %1656 = vbcast.lane.b32.xlu1 %v1642_v42, 280  ;;  %1671 = vbcast.lane.b32.xlu0 %v1661_v52, 272 }
 0x27d   : > { %v3301_v6 = vpop.eup %3300 }
 0x27e   : > { %v4404_v61 = vmul.f32 %v3301_v6, %v1516_v54  ;;  %1667 = vbcast.lane.b32.xlu1 %v1661_v52, 264 }
 0x280   : > { %v1680_v44 = vrot.slane %v4404_v61, %v4359_v41  ;;  %v1699_v10 = vrot.slane %v4404_v61, %v4366_v15  ;;  %v1718_v11 = vrot.slane %v4404_v61, %v4371_v3  ;;  %v1737_v12 = vrot.slane %v4404_v61, %v4376_v48 }
 0x281   : > { %v1756_v27 = vrot.slane %v4404_v61, %v4381_v4  ;;  %v1775_v58 = vrot.slane %v4404_v61, %v4386_v36  ;;  %v1794_v33 = vrot.slane %v4404_v61, %v4395_v60  ;;  %v1813_v43 = vrot.slane %v4404_v61, %v4400_v45 }
 0x282   : > { %1675 = vbcast.lane.b32.xlu1 %v1661_v52, 280  ;;  %1682 = vbcast.lane.b32.xlu0 %v1680_v44, 256 }
 0x286   : > { %1686 = vbcast.lane.b32.xlu1 %v1680_v44, 264  ;;  %1690 = vbcast.lane.b32.xlu0 %v1680_v44, 272 }
 0x28a   : > { %1694 = vbcast.lane.b32.xlu1 %v1680_v44, 280  ;;  %1701 = vbcast.lane.b32.xlu0 %v1699_v10, 256 }
 0x28e   : > { %1705 = vbcast.lane.b32.xlu1 %v1699_v10, 264  ;;  %1709 = vbcast.lane.b32.xlu0 %v1699_v10, 272 }
 0x292   : > { %1713 = vbcast.lane.b32.xlu1 %v1699_v10, 280  ;;  %1720 = vbcast.lane.b32.xlu0 %v1718_v11, 256  ;;  %v1934_v10 = vrot.slane %v4436_v37, %v4371_v3 }
 0x296   : > { %1724 = vbcast.lane.b32.xlu1 %v1718_v11, 264  ;;  %1728 = vbcast.lane.b32.xlu0 %v1718_v11, 272 }
 0x29a   : > { %1732 = vbcast.lane.b32.xlu1 %v1718_v11, 280  ;;  %1739 = vbcast.lane.b32.xlu0 %v1737_v12, 256 }
 0x29e   : > { %1743 = vbcast.lane.b32.xlu1 %v1737_v12, 264  ;;  %1747 = vbcast.lane.b32.xlu0 %v1737_v12, 272 }
 0x2a2   : > { %1751 = vbcast.lane.b32.xlu1 %v1737_v12, 280  ;;  %1758 = vbcast.lane.b32.xlu0 %v1756_v27, 256 }
 0x2a6   : > { %1762 = vbcast.lane.b32.xlu1 %v1756_v27, 264  ;;  %1766 = vbcast.lane.b32.xlu0 %v1756_v27, 272 }
 0x2aa   : > { %1770 = vbcast.lane.b32.xlu1 %v1756_v27, 280  ;;  %1777 = vbcast.lane.b32.xlu0 %v1775_v58, 256 }
 0x2ae   : > { %1781 = vbcast.lane.b32.xlu1 %v1775_v58, 264  ;;  %1785 = vbcast.lane.b32.xlu0 %v1775_v58, 272 }
 0x2b2   : > { %1789 = vbcast.lane.b32.xlu1 %v1775_v58, 280  ;;  %1796 = vbcast.lane.b32.xlu0 %v1794_v33, 256 }
 0x2b4   : > { %v4420_v5 = vpop.permute.xlu1 %1534  ;;  %v4422_v39 = vpop.permute.xlu0 %1530 }
 0x2b6   : > { %1800 = vbcast.lane.b32.xlu1 %v1794_v33, 264  ;;  %1804 = vbcast.lane.b32.xlu0 %v1794_v33, 272 }
 0x2b8   : > { %v4424_v40 = vpop.permute.xlu1 %1538  ;;  %v4426_v34 = vpop.permute.xlu0 %1549 }
 0x2ba   : > { %1808 = vbcast.lane.b32.xlu1 %v1794_v33, 280  ;;  %1815 = vbcast.lane.b32.xlu0 %v1813_v43, 256  ;;  %v1953_v33 = vrot.slane %v4436_v37, %v4376_v48 }
 0x2bc   : > { %v4432_v35 = vpop.permute.xlu1 %1542  ;;  %v4434_v21 = vpop.permute.xlu0 %1557 }
 0x2be   : > { %1819 = vbcast.lane.b32.xlu1 %v1813_v43, 264  ;;  %1823 = vbcast.lane.b32.xlu0 %v1813_v43, 272 }
 0x2c0   : > { %v4438_v13 = vpop.permute.xlu1 %1553  ;;  %v4440_v0 = vpop.permute.xlu0 %1568 }
 0x2c2   : > { %1827 = vbcast.lane.b32.xlu1 %v1813_v43, 280  ;;  %1898 = vbcast.lane.b32.xlu0 %v1896_v47, 256 }
 0x2c4   : > { %v4444_v46 = vpop.permute.xlu1 %1561  ;;  %v4446_v57 = vpop.permute.xlu0 %1576 }
 0x2c6   : > { %1902 = vbcast.lane.b32.xlu1 %v1896_v47, 264  ;;  %1906 = vbcast.lane.b32.xlu0 %v1896_v47, 272 }
 0x2c8   : > { %v4448_v2 = vpop.permute.xlu1 %1572  ;;  %v4450_v42 = vpop.permute.xlu0 %1587 }
 0x2ca   : > { %1910 = vbcast.lane.b32.xlu1 %v1896_v47, 280  ;;  %1917 = vbcast.lane.b32.xlu0 %v1915_v38, 256 }
 0x2cc   : > { %v4454_v52 = vpop.permute.xlu1 %1580  ;;  %v4456_v54 = vpop.permute.xlu0 %1595 }
 0x2ce   : > { %1921 = vbcast.lane.b32.xlu1 %v1915_v38, 264  ;;  %1925 = vbcast.lane.b32.xlu0 %v1915_v38, 272 }
 0x2d0   : > { %v4458_v6 = vpop.permute.xlu1 %1591  ;;  %v4460_v44 = vpop.permute.xlu0 %1606 }
 0x2d2   : > { %1929 = vbcast.lane.b32.xlu1 %v1915_v38, 280  ;;  %1936 = vbcast.lane.b32.xlu0 %v1934_v10, 256  ;;  %v1972_v38 = vrot.slane %v4436_v37, %v4381_v4 }
 0x2d4   : > { %v4464_v11 = vpop.permute.xlu1 %1599  ;;  %v4466_v12 = vpop.permute.xlu0 %1614 }
 0x2d6   : > { %1940 = vbcast.lane.b32.xlu1 %v1934_v10, 264  ;;  %1944 = vbcast.lane.b32.xlu0 %v1934_v10, 272 }
 0x2d8   : > { %v4468_v27 = vpop.permute.xlu1 %1610  ;;  %v4470_v58 = vpop.permute.xlu0 %1625 }
 0x2da   : > { %1948 = vbcast.lane.b32.xlu1 %v1934_v10, 280  ;;  %1955 = vbcast.lane.b32.xlu0 %v1953_v33, 256 }
 0x2dc   : > { %v4474_v43 = vpop.permute.xlu1 %1618  ;;  %v4476_v9 = vpop.permute.xlu0 %1633 }
 0x2dd   : > { %5128 = vst [vmem:[#allocation66_spill] sm:$0xff] %v4476_v9 }
 0x2de   : > { %1959 = vbcast.lane.b32.xlu1 %v1953_v33, 264  ;;  %1963 = vbcast.lane.b32.xlu0 %v1953_v33, 272 }
 0x2e0   : > { %v4478_v51 = vpop.permute.xlu1 %1629  ;;  %v4480_v47 = vpop.permute.xlu0 %1644 }
 0x2e1   : > { %5129 = vst [vmem:[#allocation71_spill] sm:$0xff] %v4478_v51  ;;  %5130 = vst [vmem:[#allocation72_spill] sm:$0xff] %v4480_v47 }
 0x2e2   : > { %1967 = vbcast.lane.b32.xlu1 %v1953_v33, 280  ;;  %1974 = vbcast.lane.b32.xlu0 %v1972_v38, 256 }
 0x2e4   : > { %v4484_v8 = vpop.permute.xlu1 %1637  ;;  %v4486_v63 = vpop.permute.xlu0 %1652 }
 0x2e5   : > { %5131 = vst [vmem:[#allocation73_spill] sm:$0xff] %v4484_v8  ;;  %5132 = vst [vmem:[#allocation74_spill] sm:$0xff] %v4486_v63 }
 0x2e6   : > { %1978 = vbcast.lane.b32.xlu1 %v1972_v38, 264  ;;  %1982 = vbcast.lane.b32.xlu0 %v1972_v38, 272 }
 0x2e8   : > { %v4488_v10 = vpop.permute.xlu1 %1648  ;;  %v4492_v7 = vpop.permute.xlu0 %1663 }
 0x2e9   : > { %5133 = vst [vmem:[#allocation75_spill] sm:$0xff] %v4488_v10  ;;  %5134 = vst [vmem:[#allocation76_spill] sm:$0xff] %v4492_v7  ;;  %v1520_v7 = vld [vmem:[#allocation7 + $0x8] sm:$0xff] }
 0x2ea   : > { %1986 = vbcast.lane.b32.xlu1 %v1972_v38, 280  ;;  %1993 = vbcast.lane.b32.xlu0 %v1991_v24, 256 }
 0x2ec   : > { %v4494_v14 = vpop.permute.xlu1 %1656  ;;  %v4496_v33 = vpop.permute.xlu0 %1671 }
 0x2ed   : > { %5135 = vst [vmem:[#allocation77_spill] sm:$0xff] %v4494_v14  ;;  %5136 = vst [vmem:[#allocation78_spill] sm:$0xff] %v4496_v33  ;;  %v2029_v33 = vrot.slane %v4436_v37, %v4400_v45 }
 0x2ee   : > { %1997 = vbcast.lane.b32.xlu1 %v1991_v24, 264  ;;  %2001 = vbcast.lane.b32.xlu0 %v1991_v24, 272 }
 0x2f0   : > { %v4498_v30 = vpop.permute.xlu1 %1667 }
 0x2f1   : > { %5137 = vst [vmem:[#allocation79_spill] sm:$0xff] %v4498_v30  ;;  %v1522_v30 = vmul.f32 %v4404_v61, %v4388_v18 }
 0x2f2   : > { %2005 = vbcast.lane.b32.xlu1 %v1991_v24, 280  ;;  %2012 = vbcast.lane.b32.xlu0 %v2010_v1, 256 }
 0x2f3   : > { %v4518_v10 = vsub.f32 %v1520_v7, %v1522_v30 }
 0x2f4   : > { %v4502_v63 = vpop.permute.xlu1 %1675  ;;  %v4504_v8 = vpop.permute.xlu0 %1682 }
 0x2f5   : > { %5138 = vst [vmem:[#allocation80_spill] sm:$0xff] %v4502_v63  ;;  %5139 = vst [vmem:[#allocation81_spill] sm:$0xff] %v4504_v8  ;;  %v2048_v37 = vrot.slane %v4518_v10, %v4359_v41  ;;  %v2067_v30 = vrot.slane %v4518_v10, %v4366_v15  ;;  %v1832_v8 = vmul.f32 %v5174_v50, %v4432_v35 }
 0x2f6   : > { %2016 = vbcast.lane.b32.xlu1 %v2010_v1, 264  ;;  %2020 = vbcast.lane.b32.xlu0 %v2010_v1, 272 }
 0x2f8   : > { %v4506_v38 = vpop.permute.xlu1 %1686  ;;  %v4508_v14 = vpop.permute.xlu0 %1690 }
 0x2f9   : > { %5140 = vst [vmem:[#allocation82_spill] sm:$0xff] %v4506_v38  ;;  %5141 = vst [vmem:[#allocation83_spill] sm:$0xff] %v4508_v14 }
 0x2fa   : > { %2024 = vbcast.lane.b32.xlu1 %v2010_v1, 280  ;;  %2031 = vbcast.lane.b32.xlu0 %v2029_v33, 256 }
 0x2fc   : > { %v4514_v24 = vpop.permute.xlu1 %1694  ;;  %v4516_v63 = vpop.permute.xlu0 %1701 }
 0x2fd   : > { %5142 = vst [vmem:[#allocation84_spill] sm:$0xff] %v4514_v24  ;;  %5143 = vst [vmem:[#allocation85_spill] sm:$0xff] %v4516_v63 }
 0x2fe   : > { %2035 = vbcast.lane.b32.xlu1 %v2029_v33, 264  ;;  %2039 = vbcast.lane.b32.xlu0 %v2029_v33, 272 }
 0x300   : > { %v4520_v47 = vpop.permute.xlu1 %1705  ;;  %v4522_v9 = vpop.permute.xlu0 %1709 }
 0x301   : > { %5144 = vst [vmem:[#allocation86_spill] sm:$0xff] %v4520_v47  ;;  %5145 = vst [vmem:[#allocation87_spill] sm:$0xff] %v4522_v9  ;;  %v1831_v47 = vmul.f32 %v5172_v55, %v4424_v40  ;;  %v5177_v40 = vld [vmem:[#allocation16_spill] sm:$0xff] }
 0x302   : > { %2043 = vbcast.lane.b32.xlu1 %v2029_v33, 280  ;;  %2050 = vbcast.lane.b32.xlu0 %v2048_v37, 256 }
 0x304   : > { %v4526_v18 = vpop.permute.xlu1 %1713  ;;  %v4528_v1 = vpop.permute.xlu0 %1720 }
 0x305   : > { %5146 = vst [vmem:[#allocation88_spill] sm:$0xff] %v4526_v18  ;;  %5147 = vst [vmem:[#allocation89_spill] sm:$0xff] %v4528_v1 }
 0x306   : > { %2054 = vbcast.lane.b32.xlu1 %v2048_v37, 264  ;;  %2058 = vbcast.lane.b32.xlu0 %v2048_v37, 272 }
 0x308   : > { %v4530_v61 = vpop.permute.xlu1 %1724  ;;  %v4532_v7 = vpop.permute.xlu0 %1728 }
 0x309   : > { %5148 = vst [vmem:[#allocation90_spill] sm:$0xff] %v4530_v61  ;;  %5149 = vst [vmem:[#allocation91_spill] sm:$0xff] %v4532_v7  ;;  %v2086_v61 = vrot.slane %v4518_v10, %v4371_v3 }
 0x30a   : > { %2062 = vbcast.lane.b32.xlu1 %v2048_v37, 280  ;;  %2069 = vbcast.lane.b32.xlu0 %v2067_v30, 256 }
 0x30c   : > { %v4536_v24 = vpop.permute.xlu1 %1732  ;;  %v4538_v41 = vpop.permute.xlu0 %1739 }
 0x30d   : > { %5150 = vst [vmem:[#allocation92_spill] sm:$0xff] %v4536_v24  ;;  %5151 = vst [vmem:[#allocation93_spill] sm:$0xff] %v4538_v41 }
 0x30e   : > { %2073 = vbcast.lane.b32.xlu1 %v2067_v30, 264  ;;  %2077 = vbcast.lane.b32.xlu0 %v2067_v30, 272 }
 0x310   : > { %v4540_v33 = vpop.permute.xlu1 %1743  ;;  %v4542_v18 = vpop.permute.xlu0 %1747 }
 0x311   : > { %5152 = vst [vmem:[#allocation94_spill] sm:$0xff] %v4540_v33  ;;  %5153 = vst [vmem:[#allocation95_spill] sm:$0xff] %v4542_v18  ;;  %v2105_v33 = vrot.slane %v4518_v10, %v4376_v48 }
 0x312   : > { %2081 = vbcast.lane.b32.xlu1 %v2067_v30, 280  ;;  %2088 = vbcast.lane.b32.xlu0 %v2086_v61, 256 }
 0x314   : > { %v4546_v7 = vpop.permute.xlu1 %1751  ;;  %v4548_v15 = vpop.permute.xlu0 %1758 }
 0x315   : > { %5154 = vst [vmem:[#allocation96_spill] sm:$0xff] %v4546_v7  ;;  %5155 = vst [vmem:[#allocation97_spill] sm:$0xff] %v4548_v15 }
 0x316   : > { %2092 = vbcast.lane.b32.xlu1 %v2086_v61, 264  ;;  %2096 = vbcast.lane.b32.xlu0 %v2086_v61, 272 }
 0x318   : > { %v4550_v37 = vpop.permute.xlu1 %1762  ;;  %v4552_v24 = vpop.permute.xlu0 %1766 }
 0x319   : > { %5156 = vst [vmem:[#allocation98_spill] sm:$0xff] %v4550_v37  ;;  %5157 = vst [vmem:[#allocation99_spill] sm:$0xff] %v4552_v24  ;;  %v2124_v37 = vrot.slane %v4518_v10, %v4381_v4 }
 0x31a   : > { %2100 = vbcast.lane.b32.xlu1 %v2086_v61, 280  ;;  %2107 = vbcast.lane.b32.xlu0 %v2105_v33, 256 }
 0x31c   : > { %v4556_v18 = vpop.permute.xlu1 %1770  ;;  %v4558_v3 = vpop.permute.xlu0 %1777 }
 0x31d   : > { %5158 = vst [vmem:[#allocation100_spill] sm:$0xff] %v4556_v18  ;;  %5159 = vst [vmem:[#allocation101_spill] sm:$0xff] %v4558_v3 }
 0x31e   : > { %2111 = vbcast.lane.b32.xlu1 %v2105_v33, 264  ;;  %2115 = vbcast.lane.b32.xlu0 %v2105_v33, 272 }
 0x320   : > { %v4560_v30 = vpop.permute.xlu1 %1781  ;;  %v4562_v7 = vpop.permute.xlu0 %1785 }
 0x321   : > { %5160 = vst [vmem:[#allocation102_spill] sm:$0xff] %v4560_v30  ;;  %5161 = vst [vmem:[#allocation103_spill] sm:$0xff] %v4562_v7  ;;  %v2143_v30 = vrot.slane %v4518_v10, %v4386_v36 }
 0x322   : > { %2119 = vbcast.lane.b32.xlu1 %v2105_v33, 280  ;;  %2126 = vbcast.lane.b32.xlu0 %v2124_v37, 256 }
 0x324   : > { %v4566_v24 = vpop.permute.xlu1 %1789  ;;  %v4568_v48 = vpop.permute.xlu0 %1796 }
 0x325   : > { %5162 = vst [vmem:[#allocation104_spill] sm:$0xff] %v4566_v24  ;;  %5163 = vst [vmem:[#allocation105_spill] sm:$0xff] %v4568_v48 }
 0x326   : > { %2130 = vbcast.lane.b32.xlu1 %v2124_v37, 264  ;;  %2134 = vbcast.lane.b32.xlu0 %v2124_v37, 272 }
 0x328   : > { %v4570_v61 = vpop.permute.xlu1 %1800  ;;  %v4572_v18 = vpop.permute.xlu0 %1804 }
 0x329   : > { %5164 = vst [vmem:[#allocation106_spill] sm:$0xff] %v4570_v61  ;;  %5165 = vst [vmem:[#allocation107_spill] sm:$0xff] %v4572_v18  ;;  %v2162_v61 = vrot.slane %v4518_v10, %v4395_v60 }
 0x32a   : > { %2138 = vbcast.lane.b32.xlu1 %v2124_v37, 280  ;;  %2145 = vbcast.lane.b32.xlu0 %v2143_v30, 256 }
 0x32c   : > { %v4576_v7 = vpop.permute.xlu1 %1808  ;;  %v4578_v4 = vpop.permute.xlu0 %1815 }
 0x32d   : > { %5166 = vst [vmem:[#allocation108_spill] sm:$0xff] %v4576_v7  ;;  %5167 = vst [vmem:[#allocation109_spill] sm:$0xff] %v4578_v4  ;;  %v2181_v4 = vrot.slane %v4518_v10, %v4400_v45 }
 0x32e   : > { %2149 = vbcast.lane.b32.xlu1 %v2143_v30, 264  ;;  %2153 = vbcast.lane.b32.xlu0 %v2143_v30, 272 }
 0x330   : > { %v4580_v33 = vpop.permute.xlu1 %1819  ;;  %v4582_v24 = vpop.permute.xlu0 %1823 }
 0x331   : > { %5168 = vst [vmem:[#allocation110_spill] sm:$0xff] %v4580_v33  ;;  %5169 = vst [vmem:[#allocation111_spill] sm:$0xff] %v4582_v24 }
 0x332   : > { %2157 = vbcast.lane.b32.xlu1 %v2143_v30, 280  ;;  %2164 = vbcast.lane.b32.xlu0 %v2162_v61, 256 }
 0x334   : > { %v4586_v18 = vpop.permute.xlu1 %1827  ;;  %v1899_v36 = vpop.permute.xlu0 %1898 }
 0x335   : > { %5170 = vst [vmem:[#allocation112_spill] sm:$0xff] %v4586_v18 }
 0x336   : > { %2168 = vbcast.lane.b32.xlu1 %v2162_v61, 264  ;;  %2172 = vbcast.lane.b32.xlu0 %v2162_v61, 272 }
 0x338   : > { %v1903_v37 = vpop.permute.xlu1 %1902  ;;  %v1907_v7 = vpop.permute.xlu0 %1906 }
 0x339   : > { %v2199_v63 = vadd.f32 %v1907_v7, %v1831_v47  ;;  %v1834_v47 = vmul.f32 %v5177_v40, %v4438_v13 }
 0x33a   : > { %2176 = vbcast.lane.b32.xlu1 %v2162_v61, 280  ;;  %2183 = vbcast.lane.b32.xlu0 %v2181_v4, 256  ;;  %v5171_v61 = vld [vmem:[#allocation13_spill] sm:$0xff] }
 0x33b   : > { %v1829_v9 = vmul.f32 %v5171_v61, %v4422_v39  ;;  %v5175_v39 = vld [vmem:[#allocation15_spill] sm:$0xff] }
 0x33c   : > { %v1911_v33 = vpop.permute.xlu1 %1910  ;;  %v1918_v48 = vpop.permute.xlu0 %1917 }
 0x33d   : > { %v2197_v53 = vadd.f32 %v1899_v36, %v1829_v9  ;;  %v1830_v9 = vmul.f32 %v5175_v39, %v4420_v5  ;;  %v2263_v36 = vmax.f32 %v2199_v63, 0.0  ;;  %v2200_v61 = vadd.f32 %v1911_v33, %v1832_v8  ;;  %v5178_v8 = vld [vmem:[#allocation19_spill] sm:$0xff]  ;;  %v5179_v33 = vld [vmem:[#allocation18_spill] sm:$0xff] }
 0x33e   : > { %2187 = vbcast.lane.b32.xlu1 %v2181_v4, 264  ;;  %2191 = vbcast.lane.b32.xlu0 %v2181_v4, 272  ;;  %v1835_v5 = vmul.f32 %v5178_v8, %v4434_v21 }
 0x33f   : > { %v2261_v56 = vmax.f32 %v2197_v53, 0.0  ;;  %v2198_v31 = vadd.f32 %v1903_v37, %v1830_v9  ;;  %v5176_v53 = vld [vmem:[#allocation17_spill] sm:$0xff]  ;;  %v2264_v7 = vmax.f32 %v2200_v61, 0.0  ;;  %v1836_v37 = vmul.f32 %v5179_v33, %v4444_v46  ;;  %v5181_v61 = vld [vmem:[#allocation20_spill] sm:$0xff] }
 0x340   : > { %v1922_v24 = vpop.permute.xlu1 %1921  ;;  %v1926_v60 = vpop.permute.xlu0 %1925  ;;  %v1833_v55 = vmul.f32 %v5176_v53, %v4426_v34  ;;  %v1838_v21 = vmul.f32 %v5181_v61, %v4448_v2  ;;  %v5184_v61 = vld [vmem:[#allocation22_spill] sm:$0xff] }
 0x341   : > { %v2202_v35 = vadd.f32 %v1922_v24, %v1834_v47  ;;  %v2203_v39 = vadd.f32 %v1926_v60, %v1835_v5  ;;  %v5180_v24 = vld [vmem:[#allocation21_spill] sm:$0xff]  ;;  %v1843_v5 = vmul.f32 %v3685_v23, %v4456_v54  ;;  %v1846_v23 = vmul.f32 %v3690_v25, %v4468_v27 }
 0x342   : > { %2195 = vbcast.lane.b32.xlu1 %v2181_v4, 280  ;;  %v2201_v50 = vadd.f32 %v1918_v48, %v1833_v55  ;;  %v1837_v48 = vmul.f32 %v5180_v24, %v4440_v0  ;;  %v1840_v0 = vmul.f32 %v3669_v16, %v4454_v52 }
 0x343   : > { %v2266_v9 = vmax.f32 %v2202_v35, 0.0  ;;  %v2267_v53 = vmax.f32 %v2203_v39, 0.0 }
 0x344   : > { %v1930_v30 = vpop.permute.xlu1 %1929  ;;  %v1937_v3 = vpop.permute.xlu0 %1936  ;;  %v2265_v34 = vmax.f32 %v2201_v50, 0.0 }
 0x345   : > { %v2204_v13 = vadd.f32 %v1930_v30, %v1836_v37  ;;  %v2205_v55 = vadd.f32 %v1937_v3, %v1837_v48  ;;  %v1839_v30 = vmul.f32 %v3671_v17, %v4446_v57  ;;  %v1842_v17 = vmul.f32 %v3676_v19, %v4458_v6  ;;  %v5183_v48 = vld [vmem:[#allocation71_spill] sm:$0xff] }
 0x347   : > { %v2268_v46 = vmax.f32 %v2204_v13, 0.0 }
 0x348   : > { %v1941_v18 = vpop.permute.xlu1 %1940  ;;  %v1945_v15 = vpop.permute.xlu0 %1944 }
 0x349   : > { %v2206_v40 = vadd.f32 %v1941_v18, %v1838_v21  ;;  %v2207_v50 = vadd.f32 %v1945_v15, %v1839_v30  ;;  %v1841_v18 = vmul.f32 %v3678_v20, %v4450_v42  ;;  %v1844_v20 = vmul.f32 %v3683_v22, %v4464_v11  ;;  %v5188_v30 = vld [vmem:[#allocation82_spill] sm:$0xff] }
 0x34b   : > { %v2270_v2 = vmax.f32 %v2206_v40, 0.0  ;;  %v2271_v57 = vmax.f32 %v2207_v50, 0.0 }
 0x34c   : > { %v1949_v41 = vpop.permute.xlu1 %1948  ;;  %v4590_v62 = vpop.permute.xlu0 %1955 }
 0x34d   : > { %v2209_v16 = vadd.f32 %v4590_v62, %v1841_v18 }
 0x34f   : > { %v2273_v42 = vmax.f32 %v2209_v16, 0.0 }
 0x350   : > { %v4592_v1 = vpop.permute.xlu1 %1959  ;;  %v4594_v59 = vpop.permute.xlu0 %1963 }
 0x351   : > { %v2210_v15 = vadd.f32 %v4592_v1, %v1842_v17  ;;  %v2211_v19 = vadd.f32 %v4594_v59, %v1843_v5  ;;  %v1845_v1 = vmul.f32 %v3692_v26, %v4460_v44  ;;  %v1848_v26 = vmul.f32 %v3697_v28, %v4474_v43  ;;  %v5190_v17 = vld [vmem:[#allocation85_spill] sm:$0xff] }
 0x353   : > { %v2274_v6 = vmax.f32 %v2210_v15, 0.0  ;;  %v2275_v54 = vmax.f32 %v2211_v19, 0.0 }
 0x354   : > { %v4596_v45 = vpop.permute.xlu1 %1967  ;;  %v4598_v10 = vpop.permute.xlu0 %1974 }
 0x355   : > { %v2212_v62 = vadd.f32 %v4596_v45, %v1844_v20  ;;  %v2213_v22 = vadd.f32 %v4598_v10, %v1845_v1  ;;  %v1847_v45 = vmul.f32 %v3699_v29, %v4466_v12  ;;  %v1850_v29 = vmul.f32 %v5184_v61, %v5183_v48  ;;  %v5195_v1 = vld [vmem:[#allocation37_spill] sm:$0xff] }
 0x357   : > { %v2276_v11 = vmax.f32 %v2212_v62, 0.0  ;;  %v2277_v44 = vmax.f32 %v2213_v22, 0.0  ;;  %v5194_v62 = vld [vmem:[#allocation83_spill] sm:$0xff] }
 0x358   : > { %v4602_v4 = vpop.permute.xlu1 %1978  ;;  %v4604_v14 = vpop.permute.xlu0 %1982 }
 0x359   : > { %v2215_v25 = vadd.f32 %v4604_v14, %v1847_v45 }
 0x35b   : > { %v2279_v12 = vmax.f32 %v2215_v25, 0.0  ;;  %v5199_v25 = vld [vmem:[#allocation43_spill] sm:$0xff] }
 0x35c   : > { %v4608_v49 = vpop.permute.xlu1 %1986  ;;  %v4610_v38 = vpop.permute.xlu0 %1993 }
 0x35d   : > { %5173 = vst [vmem:[#allocation13_spill] sm:$0xff] %v4610_v38  ;;  %2325 = vadd.xlane.f32.xlu0 %v2261_v56  ;;  %v2262_v56 = vmax.f32 %v2198_v31, 0.0  ;;  %v2216_v10 = vadd.f32 %v4608_v49, %v1848_v26 }
 0x35f   : > { %v2280_v43 = vmax.f32 %v2216_v10, 0.0  ;;  %v5200_v10 = vld [vmem:[#allocation90_spill] sm:$0xff] }
 0x360   : > { %v4616_v51 = vpop.permute.xlu1 %1997  ;;  %v4618_v32 = vpop.permute.xlu0 %2001 }
 0x361   : > { %2329 = vadd.xlane.f32.xlu0 %v2263_v36 }
 0x364   : > { %v4624_v38 = vpop.permute.xlu1 %2005  ;;  %v4626_v63 = vpop.permute.xlu0 %2012  ;;  %v5185_v21 = vld [vmem:[#allocation13_spill] sm:$0xff] }
 0x365   : > { %2331 = vadd.xlane.f32.xlu0 %v2264_v7  ;;  %v2269_v7 = vmax.f32 %v2205_v55, 0.0  ;;  %v5186_v55 = vld [vmem:[#allocation81_spill] sm:$0xff] }
 0x366   : > { %2327 = vadd.xlane.f32.xlu1 %v2262_v56  ;;  %v2208_v56 = vadd.f32 %v1949_v41, %v1840_v0  ;;  %v5189_v0 = vld [vmem:[#allocation34_spill] sm:$0xff] }
 0x368   : > { %v4632_v36 = vpop.permute.xlu1 %2016  ;;  %v4634_v31 = vpop.permute.xlu0 %2020  ;;  %v2272_v52 = vmax.f32 %v2208_v56, 0.0 }
 0x369   : > { %2333 = vadd.xlane.f32.xlu0 %v2265_v34  ;;  %v2214_v34 = vadd.f32 %v4602_v4, %v1846_v23  ;;  %v5182_v4 = vld [vmem:[#allocation23_spill] sm:$0xff]  ;;  %v1863_v23 = vmul.f32 %v5195_v1, %v5194_v62 }
 0x36a   : > { %2335 = vadd.xlane.f32.xlu1 %v2266_v9  ;;  %v1849_v24 = vmul.f32 %v5182_v4, %v4470_v58  ;;  %v1862_v58 = vmul.f32 %v5189_v0, %v5188_v30 }
 0x36b   : > { %v2278_v27 = vmax.f32 %v2214_v34, 0.0 }
 0x36c   : > { %v4640_v47 = vpop.permute.xlu1 %2024  ;;  %v4642_v60 = vpop.permute.xlu0 %2031  ;;  %v2217_v28 = vadd.f32 %v5185_v21, %v1849_v24  ;;  %v5202_v21 = vld [vmem:[#allocation84_spill] sm:$0xff] }
 0x36d   : > { %2337 = vadd.xlane.f32.xlu0 %v2267_v53  ;;  %v2218_v53 = vadd.f32 %v4616_v51, %v1850_v29  ;;  %v5192_v51 = vld [vmem:[#allocation86_spill] sm:$0xff] }
 0x36e   : > { %2339 = vadd.xlane.f32.xlu1 %v2268_v46  ;;  %v5187_v46 = vld [vmem:[#allocation35_spill] sm:$0xff] }
 0x36f   : > { %v1861_v49 = vmul.f32 %v5187_v46, %v5186_v55 }
 0x370   : > { %v4648_v35 = vpop.permute.xlu1 %2035  ;;  %v4650_v3 = vpop.permute.xlu0 %2039 }
 0x371   : > { %2341 = vadd.xlane.f32.xlu0 %v2269_v7  ;;  %v2281_v7 = vmax.f32 %v2217_v28, 0.0  ;;  %v5203_v28 = vld [vmem:[#allocation36_spill] sm:$0xff] }
 0x372   : > { %2343 = vadd.xlane.f32.xlu1 %v2270_v2  ;;  %v2282_v2 = vmax.f32 %v2218_v53, 0.0 }
 0x374   : > { %v4658_v8 = vpop.permute.xlu1 %2043  ;;  %v2051_v41 = vpop.permute.xlu0 %2050 }
 0x375   : > { %2345 = vadd.xlane.f32.xlu0 %v2271_v57  ;;  %v2229_v50 = vadd.f32 %v2051_v41, %v1861_v49  ;;  %v5191_v57 = vld [vmem:[#allocation39_spill] sm:$0xff] }
 0x376   : > { %2347 = vadd.xlane.f32.xlu1 %v2272_v52  ;;  %v1865_v16 = vmul.f32 %v5191_v57, %v5190_v17  ;;  %v5193_v52 = vld [vmem:[#allocation38_spill] sm:$0xff]  ;;  %v5196_v41 = vld [vmem:[#allocation87_spill] sm:$0xff] }
 0x377   : > { %v1866_v15 = vmul.f32 %v5193_v52, %v5192_v51  ;;  %v2293_v5 = vmax.f32 %v2229_v50, 0.0  ;;  %v5208_v50 = vld [vmem:[#allocation93_spill] sm:$0xff]  ;;  %v5210_v52 = vld [vmem:[#allocation94_spill] sm:$0xff] }
 0x378   : > { %v2055_v33 = vpop.permute.xlu1 %2054  ;;  %v2059_v37 = vpop.permute.xlu0 %2058 }
 0x379   : > { %2349 = vadd.xlane.f32.xlu0 %v2273_v42  ;;  %v2230_v56 = vadd.f32 %v2055_v33, %v1862_v58  ;;  %v5197_v33 = vld [vmem:[#allocation41_spill] sm:$0xff]  ;;  %v5206_v58 = vld [vmem:[#allocation91_spill] sm:$0xff] }
 0x37a   : > { %2351 = vadd.xlane.f32.xlu1 %v2274_v6 }
 0x37b   : > { %v2294_v19 = vmax.f32 %v2230_v56, 0.0 }
 0x37c   : > { %v4672_v59 = vpop.permute.xlu1 %2062  ;;  %v2070_v39 = vpop.permute.xlu0 %2069 }
 0x37d   : > { %2353 = vadd.xlane.f32.xlu0 %v2275_v54  ;;  %v2233_v20 = vadd.f32 %v2070_v39, %v1865_v16  ;;  %v1867_v54 = vmul.f32 %v5197_v33, %v5196_v41  ;;  %v5214_v33 = vld [vmem:[#allocation95_spill] sm:$0xff] }
 0x37e   : > { %2355 = vadd.xlane.f32.xlu1 %v2276_v11  ;;  %v2231_v11 = vadd.f32 %v2059_v37, %v1863_v23  ;;  %v1864_v37 = vmul.f32 %v5203_v28, %v5202_v21 }
 0x37f   : > { %v2297_v34 = vmax.f32 %v2233_v20, 0.0  ;;  %v5213_v20 = vld [vmem:[#allocation44_spill] sm:$0xff] }
 0x380   : > { %v2074_v9 = vpop.permute.xlu1 %2073  ;;  %v2078_v13 = vpop.permute.xlu0 %2077  ;;  %v2295_v24 = vmax.f32 %v2231_v11, 0.0  ;;  %v2232_v55 = vadd.f32 %v4672_v59, %v1864_v37  ;;  %v5222_v37 = vld [vmem:[#allocation99_spill] sm:$0xff] }
 0x381   : > { %2357 = vadd.xlane.f32.xlu0 %v2277_v44  ;;  %v2234_v6 = vadd.f32 %v2074_v9, %v1866_v15  ;;  %v2235_v26 = vadd.f32 %v2078_v13, %v1867_v54  ;;  %v5198_v44 = vld [vmem:[#allocation89_spill] sm:$0xff]  ;;  %v5201_v9 = vld [vmem:[#allocation42_spill] sm:$0xff]  ;;  %v5205_v13 = vld [vmem:[#allocation40_spill] sm:$0xff] }
 0x382   : > { %2359 = vadd.xlane.f32.xlu1 %v2278_v27  ;;  %v1869_v27 = vmul.f32 %v5199_v25, %v5198_v44  ;;  %v1870_v4 = vmul.f32 %v5201_v9, %v5200_v10  ;;  %v2296_v17 = vmax.f32 %v2232_v55, 0.0  ;;  %v5211_v15 = vld [vmem:[#allocation46_spill] sm:$0xff]  ;;  %v5215_v54 = vld [vmem:[#allocation49_spill] sm:$0xff] }
 0x383   : > { %v2298_v45 = vmax.f32 %v2234_v6, 0.0  ;;  %v2299_v61 = vmax.f32 %v2235_v26, 0.0  ;;  %v1874_v59 = vmul.f32 %v5211_v15, %v5210_v52  ;;  %v1875_v11 = vmul.f32 %v5215_v54, %v5214_v33  ;;  %v5218_v10 = vld [vmem:[#allocation98_spill] sm:$0xff]  ;;  %v5224_v55 = vld [vmem:[#allocation101_spill] sm:$0xff] }
 0x384   : > { %v2082_v14 = vpop.permute.xlu1 %2081  ;;  %v2089_v40 = vpop.permute.xlu0 %2088  ;;  %v5219_v9 = vld [vmem:[#allocation50_spill] sm:$0xff] }
 0x385   : > { %2361 = vadd.xlane.f32.xlu0 %v2279_v12  ;;  %v2237_v48 = vadd.f32 %v2089_v40, %v1869_v27 }
 0x386   : > { %2363 = vadd.xlane.f32.xlu1 %v2280_v43  ;;  %v5204_v43 = vld [vmem:[#allocation88_spill] sm:$0xff] }
 0x387   : > { %v1868_v53 = vmul.f32 %v5205_v13, %v5204_v43  ;;  %v2301_v46 = vmax.f32 %v2237_v48, 0.0  ;;  %v5223_v43 = vld [vmem:[#allocation53_spill] sm:$0xff] }
 0x388   : > { %v2093_v18 = vpop.permute.xlu1 %2092  ;;  %v2097_v42 = vpop.permute.xlu0 %2096  ;;  %v1879_v13 = vmul.f32 %v5223_v43, %v5222_v37  ;;  %v5242_v37 = vld [vmem:[#allocation73_spill] sm:$0xff]  ;;  %v5243_v43 = vld [vmem:[#allocation24_spill] sm:$0xff] }
 0x389   : > { %2365 = vadd.xlane.f32.xlu0 %v2281_v7  ;;  %v2238_v29 = vadd.f32 %v2093_v18, %v1870_v4  ;;  %v2236_v30 = vadd.f32 %v2082_v14, %v1868_v53  ;;  %v5207_v7 = vld [vmem:[#allocation45_spill] sm:$0xff]  ;;  %v5212_v14 = vld [vmem:[#allocation92_spill] sm:$0xff]  ;;  %v1878_v4 = vmul.f32 %v5219_v9, %v5218_v10 }
 0x38a   : > { %2367 = vadd.xlane.f32.xlu1 %v2282_v2  ;;  %v1871_v40 = vmul.f32 %v5207_v7, %v5206_v58  ;;  %v5209_v2 = vld [vmem:[#allocation47_spill] sm:$0xff]  ;;  %v5238_v9 = vld [vmem:[#allocation105_spill] sm:$0xff] }
 0x38b   : > { %v2302_v0 = vmax.f32 %v2238_v29, 0.0  ;;  %v1873_v56 = vmul.f32 %v5209_v2, %v5208_v50  ;;  %v2300_v16 = vmax.f32 %v2236_v30, 0.0  ;;  %v5226_v50 = vld [vmem:[#allocation102_spill] sm:$0xff] }
 0x38c   : > { %v2101_v22 = vpop.permute.xlu1 %2100  ;;  %v2108_v39 = vpop.permute.xlu0 %2107  ;;  %v2239_v57 = vadd.f32 %v2097_v42, %v1871_v40  ;;  %v5216_v42 = vld [vmem:[#allocation97_spill] sm:$0xff]  ;;  %v5227_v2 = vld [vmem:[#allocation54_spill] sm:$0xff] }
 0x38d   : > { %2389 = vadd.xlane.f32.xlu0 %v2293_v5  ;;  %v2241_v51 = vadd.f32 %v2108_v39, %v1873_v56  ;;  %v1882_v56 = vmul.f32 %v5227_v2, %v5226_v50  ;;  %v5248_v50 = vld [vmem:[#allocation79_spill] sm:$0xff]  ;;  %v5249_v2 = vld [vmem:[#allocation30_spill] sm:$0xff] }
 0x38e   : > { %2391 = vadd.xlane.f32.xlu1 %v2294_v19  ;;  %v1872_v19 = vmul.f32 %v5213_v20, %v5212_v14  ;;  %v2303_v6 = vmax.f32 %v2239_v57, 0.0  ;;  %v5232_v20 = vld [vmem:[#allocation75_spill] sm:$0xff] }
 0x38f   : > { %v2305_v23 = vmax.f32 %v2241_v51, 0.0 }
 0x390   : > { %v2112_v12 = vpop.permute.xlu1 %2111  ;;  %v2116_v49 = vpop.permute.xlu0 %2115  ;;  %v2240_v1 = vadd.f32 %v2101_v22, %v1872_v19  ;;  %v5220_v22 = vld [vmem:[#allocation96_spill] sm:$0xff]  ;;  %v5233_v19 = vld [vmem:[#allocation26_spill] sm:$0xff] }
 0x391   : > { %2397 = vadd.xlane.f32.xlu0 %v2297_v34  ;;  %v2242_v62 = vadd.f32 %v2112_v12, %v1874_v59  ;;  %v5217_v34 = vld [vmem:[#allocation51_spill] sm:$0xff]  ;;  %v2243_v44 = vadd.f32 %v2116_v49, %v1875_v11  ;;  %v5230_v59 = vld [vmem:[#allocation72_spill] sm:$0xff] }
 0x392   : > { %2399 = vadd.xlane.f32.xlu1 %v2298_v45  ;;  %v1877_v45 = vmul.f32 %v5217_v34, %v5216_v42  ;;  %v2304_v27 = vmax.f32 %v2240_v1, 0.0  ;;  %v5234_v11 = vld [vmem:[#allocation100_spill] sm:$0xff]  ;;  %v5236_v34 = vld [vmem:[#allocation103_spill] sm:$0xff] }
 0x393   : > { %v2306_v26 = vmax.f32 %v2242_v62, 0.0  ;;  %v2307_v29 = vmax.f32 %v2243_v44, 0.0  ;;  %v5235_v42 = vld [vmem:[#allocation52_spill] sm:$0xff] }
 0x394   : > { %v2120_v18 = vpop.permute.xlu1 %2119  ;;  %v2127_v5 = vpop.permute.xlu0 %2126 }
 0x395   : > { %2393 = vadd.xlane.f32.xlu0 %v2295_v24  ;;  %v2245_v39 = vadd.f32 %v2127_v5, %v1877_v45  ;;  %v5221_v24 = vld [vmem:[#allocation48_spill] sm:$0xff]  ;;  %v5231_v5 = vld [vmem:[#allocation27_spill] sm:$0xff]  ;;  %v5237_v45 = vld [vmem:[#allocation57_spill] sm:$0xff] }
 0x396   : > { %2401 = vadd.xlane.f32.xlu1 %v2299_v61  ;;  %v1876_v48 = vmul.f32 %v5221_v24, %v5220_v22  ;;  %v1853_v14 = vmul.f32 %v5231_v5, %v5230_v59  ;;  %v5240_v24 = vld [vmem:[#allocation106_spill] sm:$0xff]  ;;  %v5252_v59 = vld [vmem:[#allocation107_spill] sm:$0xff]  ;;  %v5253_v5 = vld [vmem:[#allocation61_spill] sm:$0xff] }
 0x397   : > { %v2309_v28 = vmax.f32 %v2245_v39, 0.0 }
 0x398   : > { %v2131_v41 = vpop.permute.xlu1 %2130  ;;  %v2135_v25 = vpop.permute.xlu0 %2134  ;;  %v2244_v21 = vadd.f32 %v2120_v18, %v1876_v48  ;;  %v5228_v18 = vld [vmem:[#allocation66_spill] sm:$0xff]  ;;  %v2221_v1 = vadd.f32 %v4626_v63, %v1853_v14  ;;  %v5239_v63 = vld [vmem:[#allocation59_spill] sm:$0xff]  ;;  %v1887_v14 = vmul.f32 %v5253_v5, %v5252_v59 }
 0x399   : > { %2405 = vadd.xlane.f32.xlu0 %v2301_v46  ;;  %v2246_v12 = vadd.f32 %v2131_v41, %v1878_v4  ;;  %v5225_v46 = vld [vmem:[#allocation55_spill] sm:$0xff]  ;;  %v1885_v4 = vmul.f32 %v5239_v63, %v5238_v9 }
 0x39a   : > { %2407 = vadd.xlane.f32.xlu1 %v2302_v0  ;;  %v1881_v49 = vmul.f32 %v5225_v46, %v5224_v55  ;;  %v2247_v0 = vadd.f32 %v2135_v25, %v1879_v13  ;;  %v2308_v58 = vmax.f32 %v2244_v21, 0.0  ;;  %v2285_v44 = vmax.f32 %v2221_v1, 0.0 }
 0x39b   : > { %v2310_v30 = vmax.f32 %v2246_v12, 0.0  ;;  %v1852_v13 = vmul.f32 %v5243_v43, %v5242_v37 }
 0x39c   : > { %v2139_v61 = vpop.permute.xlu1 %2138  ;;  %v2146_v53 = vpop.permute.xlu0 %2145 }
 0x39d   : > { %2395 = vadd.xlane.f32.xlu0 %v2296_v17  ;;  %v2249_v7 = vadd.f32 %v2146_v53, %v1881_v49  ;;  %v5229_v17 = vld [vmem:[#allocation25_spill] sm:$0xff]  ;;  %v2220_v46 = vadd.f32 %v4624_v38, %v1852_v13 }
 0x39e   : > { %2403 = vadd.xlane.f32.xlu1 %v2300_v16  ;;  %v1851_v57 = vmul.f32 %v5229_v17, %v5228_v18  ;;  %v2311_v16 = vmax.f32 %v2247_v0, 0.0  ;;  %v5245_v53 = vld [vmem:[#allocation29_spill] sm:$0xff] }
 0x39f   : > { %v2313_v15 = vmax.f32 %v2249_v7, 0.0  ;;  %v5247_v7 = vld [vmem:[#allocation31_spill] sm:$0xff]  ;;  %v2284_v17 = vmax.f32 %v2220_v46, 0.0 }
 0x3a0   : > { %v2150_v40 = vpop.permute.xlu1 %2149  ;;  %v2219_v52 = vadd.f32 %v4618_v32, %v1851_v57  ;;  %v2154_v62 = vpop.permute.xlu0 %2153  ;;  %v1880_v32 = vmul.f32 %v5235_v42, %v5234_v11  ;;  %v5256_v11 = vld [vmem:[#allocation110_spill] sm:$0xff] }
 0x3a1   : > { %2409 = vadd.xlane.f32.xlu0 %v2303_v6  ;;  %v2250_v51 = vadd.f32 %v2150_v40, %v1882_v56  ;;  %v1854_v6 = vmul.f32 %v5233_v19, %v5232_v20  ;;  %v1858_v56 = vmul.f32 %v5249_v2, %v5248_v50 }
 0x3a2   : > { %2413 = vadd.xlane.f32.xlu1 %v2305_v23  ;;  %v2283_v33 = vmax.f32 %v2219_v52, 0.0  ;;  %v2248_v25 = vadd.f32 %v2139_v61, %v1880_v32  ;;  %v5244_v61 = vld [vmem:[#allocation74_spill] sm:$0xff]  ;;  %v5250_v52 = vld [vmem:[#allocation104_spill] sm:$0xff] }
 0x3a3   : > { %v2314_v23 = vmax.f32 %v2250_v51, 0.0  ;;  %v2222_v54 = vadd.f32 %v4632_v36, %v1854_v6  ;;  %v5241_v36 = vld [vmem:[#allocation58_spill] sm:$0xff]  ;;  %v1855_v55 = vmul.f32 %v5245_v53, %v5244_v61  ;;  %v2226_v38 = vadd.f32 %v4648_v35, %v1858_v56  ;;  %v5266_v53 = vld [vmem:[#allocation80_spill] sm:$0xff] }
 0x3a4   : > { %v2158_v41 = vpop.permute.xlu1 %2157  ;;  %v2165_v10 = vpop.permute.xlu0 %2164  ;;  %v1886_v48 = vmul.f32 %v5241_v36, %v5240_v24  ;;  %v5257_v35 = vld [vmem:[#allocation62_spill] sm:$0xff]  ;;  %v5262_v24 = vld [vmem:[#allocation108_spill] sm:$0xff] }
 0x3a5   : > { %2415 = vadd.xlane.f32.xlu0 %v2306_v26  ;;  %v1883_v26 = vmul.f32 %v5237_v45, %v5236_v34  ;;  %v2253_v12 = vadd.f32 %v2165_v10, %v1885_v4  ;;  %v2290_v6 = vmax.f32 %v2226_v38, 0.0  ;;  %v1890_v42 = vmul.f32 %v5257_v35, %v5256_v11  ;;  %v5263_v36 = vld [vmem:[#allocation60_spill] sm:$0xff] }
 0x3a6   : > { %2411 = vadd.xlane.f32.xlu1 %v2304_v27  ;;  %v2286_v27 = vmax.f32 %v2222_v54, 0.0 }
 0x3a7   : > { %v2251_v39 = vadd.f32 %v2154_v62, %v1883_v26  ;;  %v2317_v49 = vmax.f32 %v2253_v12, 0.0  ;;  %v5264_v12 = vld [vmem:[#allocation111_spill] sm:$0xff] }
 0x3a8   : > { %v2169_v22 = vpop.permute.xlu1 %2168  ;;  %v2173_v18 = vpop.permute.xlu0 %2172 }
 0x3a9   : > { %2417 = vadd.xlane.f32.xlu0 %v2307_v29  ;;  %v2312_v29 = vmax.f32 %v2248_v25, 0.0  ;;  %v2315_v21 = vmax.f32 %v2251_v39, 0.0  ;;  %v2255_v62 = vadd.f32 %v2173_v18, %v1887_v14  ;;  %v5259_v25 = vld [vmem:[#allocation28_spill] sm:$0xff]  ;;  %v5261_v39 = vld [vmem:[#allocation33_spill] sm:$0xff]  ;;  %v5272_v14 = vld [vmem:[#allocation70_spill] sm:$0xff] }
 0x3aa   : > { %2421 = vadd.xlane.f32.xlu1 %v2309_v28  ;;  %v2254_v28 = vadd.f32 %v2169_v22, %v1886_v48  ;;  %v1888_v48 = vmul.f32 %v5263_v36, %v5262_v24 }
 0x3ab   : > { %v2319_v45 = vmax.f32 %v2255_v62, 0.0  ;;  %v5273_v62 = vld [vmem:[#allocation68_spill] sm:$0xff] }
 0x3ac   : > { %v2318_v0 = vmax.f32 %v2254_v28, 0.0  ;;  %v2184_v1 = vpop.permute.xlu0 %2183 }
 0x3ad   : > { %2423 = vadd.xlane.f32.xlu0 %v2310_v30  ;;  %v2223_v30 = vadd.f32 %v4634_v31, %v1855_v55  ;;  %v5267_v55 = vld [vmem:[#allocation32_spill] sm:$0xff] }
 0x3ae   : > { %2419 = vadd.xlane.f32.xlu1 %v2308_v58  ;;  %v5246_v58 = vld [vmem:[#allocation76_spill] sm:$0xff] }
 0x3af   : > { %v1857_v40 = vmul.f32 %v5247_v7, %v5246_v58  ;;  %v2287_v51 = vmax.f32 %v2223_v30, 0.0 }
 0x3b1   : > { %2425 = vadd.xlane.f32.xlu0 %v2311_v16  ;;  %v2225_v57 = vadd.f32 %v4642_v60, %v1857_v40  ;;  %v2177_v16 = vpop.permute.xlu1 %2176 }
 0x3b2   : > { %2429 = vadd.xlane.f32.xlu1 %v2313_v15  ;;  %v5251_v15 = vld [vmem:[#allocation56_spill] sm:$0xff]  ;;  %v2256_v43 = vadd.f32 %v2177_v16, %v1888_v48 }
 0x3b3   : > { %v1884_v31 = vmul.f32 %v5251_v15, %v5250_v52  ;;  %v2289_v20 = vmax.f32 %v2225_v57, 0.0  ;;  %v5270_v15 = vld [vmem:[#allocation67_spill] sm:$0xff] }
 0x3b4   : > { %v2320_v58 = vmax.f32 %v2256_v43, 0.0 }
 0x3b5   : > { %2431 = vadd.xlane.f32.xlu0 %v2314_v23  ;;  %v2252_v19 = vadd.f32 %v2158_v41, %v1884_v31  ;;  %v5254_v23 = vld [vmem:[#allocation109_spill] sm:$0xff]  ;;  %v2188_v54 = vpop.permute.xlu1 %2187  ;;  %v5260_v41 = vld [vmem:[#allocation78_spill] sm:$0xff] }
 0x3b6   : > { %2369 = vadd.xlane.f32.xlu1 %v2283_v33  ;;  %v5255_v33 = vld [vmem:[#allocation63_spill] sm:$0xff]  ;;  %v2258_v26 = vadd.f32 %v2188_v54, %v1890_v42  ;;  %v1859_v10 = vmul.f32 %v5261_v39, %v5260_v41 }
 0x3b7   : > { %v1889_v60 = vmul.f32 %v5255_v33, %v5254_v23  ;;  %v2316_v32 = vmax.f32 %v2252_v19, 0.0 }
 0x3b8   : > { %v2227_v4 = vadd.f32 %v4650_v3, %v1859_v10  ;;  %v2322_v22 = vmax.f32 %v2258_v26, 0.0  ;;  %v5268_v3 = vld [vmem:[#allocation112_spill] sm:$0xff] }
 0x3b9   : > { %2373 = vadd.xlane.f32.xlu0 %v2285_v44  ;;  %v2257_v34 = vadd.f32 %v2184_v1, %v1889_v60  ;;  %v5258_v44 = vld [vmem:[#allocation77_spill] sm:$0xff]  ;;  %v2196_v46 = vpop.permute.xlu1 %2195 }
 0x3ba   : > { %2375 = vadd.xlane.f32.xlu1 %v2286_v27  ;;  %v1856_v27 = vmul.f32 %v5259_v25, %v5258_v44  ;;  %v2291_v13 = vmax.f32 %v2227_v4, 0.0 }
 0x3bb   : > { %v2321_v63 = vmax.f32 %v2257_v34, 0.0 }
 0x3bc   : > { %v2224_v9 = vadd.f32 %v4640_v47, %v1856_v27  ;;  %v1860_v47 = vmul.f32 %v5267_v55, %v5266_v53 }
 0x3bd   : > { %2427 = vadd.xlane.f32.xlu0 %v2312_v29  ;;  %v2192_v29 = vpop.permute.xlu0 %2191 }
 0x3be   : > { %2433 = vadd.xlane.f32.xlu1 %v2315_v21  ;;  %v5265_v21 = vld [vmem:[#allocation65_spill] sm:$0xff]  ;;  %v2288_v37 = vmax.f32 %v2224_v9, 0.0 }
 0x3bf   : > { %v1891_v28 = vmul.f32 %v5265_v21, %v5264_v12 }
 0x3c1   : > { %2437 = vadd.xlane.f32.xlu0 %v2317_v49  ;;  %v2259_v61 = vadd.f32 %v2192_v29, %v1891_v28  ;;  %v5269_v49 = vld [vmem:[#allocation64_spill] sm:$0xff] }
 0x3c2   : > { %2439 = vadd.xlane.f32.xlu1 %v2318_v0  ;;  %v1892_v30 = vmul.f32 %v5269_v49, %v5268_v3  ;;  %v2228_v0 = vadd.f32 %v4658_v8, %v1860_v47  ;;  %v5271_v8 = vld [vmem:[#allocation69_spill] sm:$0xff] }
 0x3c3   : > { %v2323_v7 = vmax.f32 %v2259_v61, 0.0 }
 0x3c4   : > { %v2260_v40 = vadd.f32 %v2196_v46, %v1892_v30  ;;  %v2292_v50 = vmax.f32 %v2228_v0, 0.0 }
 0x3c5   : > { %2371 = vadd.xlane.f32.xlu0 %v2284_v17 }
 0x3c6   : > { %2377 = vadd.xlane.f32.xlu1 %v2287_v51  ;;  %v2324_v2 = vmax.f32 %v2260_v40, 0.0 }
 0x3c9   : > { %2381 = vadd.xlane.f32.xlu0 %v2289_v20 }
 0x3ca   : > { %2383 = vadd.xlane.f32.xlu1 %v2290_v6 }
 0x3cd   : > { %2435 = vadd.xlane.f32.xlu0 %v2316_v32 }
 0x3ce   : > { %2441 = vadd.xlane.f32.xlu1 %v2319_v45 }
 0x3d1   : > { %2445 = vadd.xlane.f32.xlu0 %v2321_v63 }
 0x3d2   : > { %2447 = vadd.xlane.f32.xlu1 %v2322_v22 }
 0x3d5   : > { %2379 = vadd.xlane.f32.xlu0 %v2288_v37 }
 0x3d6   : > { %2385 = vadd.xlane.f32.xlu1 %v2291_v13 }
 0x3d9   : > { %2443 = vadd.xlane.f32.xlu0 %v2320_v58 }
 0x3da   : > { %2449 = vadd.xlane.f32.xlu1 %v2323_v7 }
 0x3dd   : > { %2387 = vadd.xlane.f32.xlu0 %v2292_v50 }
 0x3de   : > { %2451 = vadd.xlane.f32.xlu1 %v2324_v2 }
 0x3e6   : > { %v2326_v56 = vpop.xlane.xlu0 %2325 }
 0x3e7   : > { %v2453_v17 = vmul.f32 0.0078125, %v2326_v56 }
 0x3e9   : > { %v2584_v31 = vrot.slane %v2453_v17, %v5270_v15 }
 0x3ea   : > { %v2330_v18 = vpop.xlane.xlu0 %2329 }
 0x3eb   : > { %v2455_v16 = vmul.f32 0.0078125, %v2330_v18 }
 0x3ed   : > { %v2593_v20 = vrot.slane %v2455_v16, %v5272_v14 }
 0x3ee   : > { %v2332_v57 = vpop.xlane.xlu0 %2331 }
 0x3ef   : > { %v2328_v51 = vpop.xlane.xlu1 %2327  ;;  %v2456_v38 = vmul.f32 0.0078125, %v2332_v57 }
 0x3f0   : > { %v2454_v52 = vmul.f32 0.0078125, %v2328_v51 }
 0x3f1   : > { %v2598_v1 = vrot.slane %v2456_v38, %v5273_v62 }
 0x3f2   : > { %v2588_v59 = vrot.slane %v2454_v52, %v5271_v8  ;;  %v2334_v5 = vpop.xlane.xlu0 %2333 }
 0x3f3   : > { %v2457_v19 = vmul.f32 0.0078125, %v2334_v5  ;;  %v2336_v6 = vpop.xlane.xlu1 %2335 }
 0x3f4   : > { %v2589_v23 = vsel %vm780_vm0, %v2588_v59, %v2584_v31  ;;  %v2458_v33 = vmul.f32 0.0078125, %v2336_v6 }
 0x3f5   : > { %v2594_v60 = vsel %vm787_vm1, %v2593_v20, %v2589_v23  ;;  %v2603_v54 = vrot.slane %v2457_v19, %v5270_v15 }
 0x3f6   : > { %v2607_v11 = vrot.slane %v2458_v33, %v5271_v8  ;;  %v2338_v35 = vpop.xlane.xlu0 %2337  ;;  %v2599_v42 = vsel %vm794_vm2, %v2598_v1, %v2594_v60 }
 0x3f7   : > { %v2459_v32 = vmul.f32 0.0078125, %v2338_v35  ;;  %v2340_v34 = vpop.xlane.xlu1 %2339 }
 0x3f8   : > { %v2608_v45 = vsel %vm780_vm0, %v2607_v11, %v2603_v54  ;;  %v2460_v26 = vmul.f32 0.0078125, %v2340_v34 }
 0x3f9   : > { %v2612_v44 = vrot.slane %v2459_v32, %v5272_v14 }
 0x3fa   : > { %v2617_v25 = vrot.slane %v2460_v26, %v5273_v62  ;;  %v2342_v27 = vpop.xlane.xlu0 %2341 }
 0x3fb   : > { %v2613_v41 = vsel %vm787_vm1, %v2612_v44, %v2608_v45  ;;  %v2461_v39 = vmul.f32 0.0078125, %v2342_v27  ;;  %v2344_v10 = vpop.xlane.xlu1 %2343 }
 0x3fc   : > { %v2618_v9 = vsel %vm794_vm2, %v2617_v25, %v2613_v41  ;;  %v2462_v63 = vmul.f32 0.0078125, %v2344_v10 }
 0x3fd   : > { %v2885_v4 = vsel %vm1081_vm3, %v2618_v9, %v2599_v42  ;;  %v2622_v22 = vrot.slane %v2461_v39, %v5270_v15 }
 0x3fe   : > { %v2626_v24 = vrot.slane %v2462_v63, %v5271_v8  ;;  %v2346_v36 = vpop.xlane.xlu0 %2345 }
 0x3ff   : > { %v2463_v48 = vmul.f32 0.0078125, %v2346_v36  ;;  %v2348_v29 = vpop.xlane.xlu1 %2347 }
 0x400   : > { %v2627_v12 = vsel %vm780_vm0, %v2626_v24, %v2622_v22  ;;  %v2464_v21 = vmul.f32 0.0078125, %v2348_v29 }
 0x401   : > { %v2631_v28 = vrot.slane %v2463_v48, %v5272_v14 }
 0x402   : > { %v2636_v37 = vrot.slane %v2464_v21, %v5273_v62  ;;  %v2350_v43 = vpop.xlane.xlu0 %2349 }
 0x403   : > { %v2632_v13 = vsel %vm787_vm1, %v2631_v28, %v2627_v12  ;;  %v2465_v61 = vmul.f32 0.0078125, %v2350_v43  ;;  %v2352_v53 = vpop.xlane.xlu1 %2351 }
 0x404   : > { %v2637_v55 = vsel %vm794_vm2, %v2636_v37, %v2632_v13  ;;  %v2466_v47 = vmul.f32 0.0078125, %v2352_v53 }
 0x405   : > { %v2886_v46 = vsel %vm1083_vm4, %v2637_v55, %v2885_v4  ;;  %v2641_v3 = vrot.slane %v2465_v61, %v5270_v15 }
 0x406   : > { %v2645_v49 = vrot.slane %v2466_v47, %v5271_v8  ;;  %v2354_v30 = vpop.xlane.xlu0 %2353 }
 0x407   : > { %v2467_v0 = vmul.f32 0.0078125, %v2354_v30  ;;  %v2356_v58 = vpop.xlane.xlu1 %2355 }
 0x408   : > { %v2646_v7 = vsel %vm780_vm0, %v2645_v49, %v2641_v3  ;;  %v2468_v40 = vmul.f32 0.0078125, %v2356_v58 }
 0x409   : > { %v2650_v50 = vrot.slane %v2467_v0, %v5272_v14 }
 0x40a   : > { %v2655_v2 = vrot.slane %v2468_v40, %v5273_v62  ;;  %v2358_v56 = vpop.xlane.xlu0 %2357 }
 0x40b   : > { %v2651_v18 = vsel %vm787_vm1, %v2650_v50, %v2646_v7  ;;  %v2469_v17 = vmul.f32 0.0078125, %v2358_v56  ;;  %v2360_v57 = vpop.xlane.xlu1 %2359 }
 0x40c   : > { %v2656_v16 = vsel %vm794_vm2, %v2655_v2, %v2651_v18  ;;  %v2470_v51 = vmul.f32 0.0078125, %v2360_v57 }
 0x40d   : > { %v2887_v38 = vsel %vm1085_vm5, %v2656_v16, %v2886_v46  ;;  %v2660_v52 = vrot.slane %v2469_v17, %v5270_v15 }
 0x40e   : > { %v2664_v31 = vrot.slane %v2470_v51, %v5271_v8  ;;  %v2362_v59 = vpop.xlane.xlu0 %2361 }
 0x40f   : > { %v2471_v5 = vmul.f32 0.0078125, %v2362_v59  ;;  %v2364_v20 = vpop.xlane.xlu1 %2363 }
 0x410   : > { %v2665_v19 = vsel %vm780_vm0, %v2664_v31, %v2660_v52  ;;  %v2472_v6 = vmul.f32 0.0078125, %v2364_v20 }
 0x411   : > { %v2669_v1 = vrot.slane %v2471_v5, %v5272_v14 }
 0x412   : > { %v2674_v23 = vrot.slane %v2472_v6, %v5273_v62  ;;  %v2366_v33 = vpop.xlane.xlu0 %2365 }
 0x413   : > { %v2670_v60 = vsel %vm787_vm1, %v2669_v1, %v2665_v19  ;;  %v2473_v54 = vmul.f32 0.0078125, %v2366_v33  ;;  %v2368_v11 = vpop.xlane.xlu1 %2367 }
 0x414   : > { %v2675_v35 = vsel %vm794_vm2, %v2674_v23, %v2670_v60  ;;  %v2474_v42 = vmul.f32 0.0078125, %v2368_v11 }
 0x415   : > { %v4820_v32 = vsel %vm1087_vm6, %v2675_v35, %v2887_v38  ;;  %v2679_v34 = vrot.slane %v2473_v54, %v5270_v15 }
 0x416   : > { %v2683_v45 = vrot.slane %v2474_v42, %v5271_v8  ;;  %v2390_v26 = vpop.xlane.xlu0 %2389 }
 0x417   : > { %v2485_v44 = vmul.f32 0.0078125, %v2390_v26  ;;  %v2392_v25 = vpop.xlane.xlu1 %2391 }
 0x418   : > { %v2684_v27 = vsel %vm780_vm0, %v2683_v45, %v2679_v34  ;;  %v2486_v41 = vmul.f32 0.0078125, %v2392_v25 }
 0x419   : > { %v2736_v39 = vrot.slane %v2485_v44, %v5270_v15 }
 0x41a   : > { %v2740_v10 = vrot.slane %v2486_v41, %v5271_v8  ;;  %v2398_v9 = vpop.xlane.xlu0 %2397 }
 0x41b   : > { %v2489_v63 = vmul.f32 0.0078125, %v2398_v9  ;;  %v2400_v4 = vpop.xlane.xlu1 %2399 }
 0x41c   : > { %v2741_v22 = vsel %vm780_vm0, %v2740_v10, %v2736_v39  ;;  %v2490_v24 = vmul.f32 0.0078125, %v2400_v4 }
 0x41d   : > { %v2755_v36 = vrot.slane %v2489_v63, %v5270_v15 }
 0x41e   : > { %v2759_v48 = vrot.slane %v2490_v24, %v5271_v8  ;;  %v2394_v29 = vpop.xlane.xlu0 %2393 }
 0x41f   : > { %v2487_v12 = vmul.f32 0.0078125, %v2394_v29  ;;  %v2402_v21 = vpop.xlane.xlu1 %2401 }
 0x420   : > { %v2760_v28 = vsel %vm780_vm0, %v2759_v48, %v2755_v36  ;;  %v2491_v37 = vmul.f32 0.0078125, %v2402_v21 }
 0x421   : > { %v2745_v43 = vrot.slane %v2487_v12, %v5272_v14 }
 0x422   : > { %v2764_v13 = vrot.slane %v2491_v37, %v5272_v14  ;;  %v2406_v61 = vpop.xlane.xlu0 %2405 }
 0x423   : > { %v2746_v53 = vsel %vm787_vm1, %v2745_v43, %v2741_v22  ;;  %v2408_v55 = vpop.xlane.xlu1 %2407  ;;  %v2493_v35 = vmul.f32 0.0078125, %v2406_v61 }
 0x424   : > { %v2765_v47 = vsel %vm787_vm1, %v2764_v13, %v2760_v28  ;;  %v2494_v42 = vmul.f32 0.0078125, %v2408_v55 }
 0x425   : > { %v2774_v10 = vrot.slane %v2493_v35, %v5270_v15 }
 0x426   : > { %v2396_v46 = vpop.xlane.xlu0 %2395  ;;  %v2778_v9 = vrot.slane %v2494_v42, %v5271_v8 }
 0x427   : > { %v2488_v3 = vmul.f32 0.0078125, %v2396_v46  ;;  %v2404_v49 = vpop.xlane.xlu1 %2403 }
 0x428   : > { %v2492_v30 = vmul.f32 0.0078125, %v2404_v49  ;;  %v2779_v37 = vsel %vm780_vm0, %v2778_v9, %v2774_v10 }
 0x429   : > { %v2750_v0 = vrot.slane %v2488_v3, %v5273_v62 }
 0x42a   : > { %v2769_v58 = vrot.slane %v2492_v30, %v5273_v62  ;;  %v2410_v7 = vpop.xlane.xlu0 %2409 }
 0x42b   : > { %v2751_v40 = vsel %vm794_vm2, %v2750_v0, %v2746_v53  ;;  %v2414_v50 = vpop.xlane.xlu1 %2413  ;;  %v2495_v26 = vmul.f32 0.0078125, %v2410_v7 }
 0x42c   : > { %v2770_v2 = vsel %vm794_vm2, %v2769_v58, %v2765_v47  ;;  %v2497_v12 = vmul.f32 0.0078125, %v2414_v50 }
 0x42d   : > { %v2892_v56 = vsel %vm1081_vm3, %v2770_v2, %v2751_v40  ;;  %v2783_v22 = vrot.slane %v2495_v26, %v5272_v14 }
 0x42e   : > { %v2416_v18 = vpop.xlane.xlu0 %2415  ;;  %v2793_v30 = vrot.slane %v2497_v12, %v5270_v15 }
 0x42f   : > { %v2412_v17 = vpop.xlane.xlu1 %2411  ;;  %v2498_v24 = vmul.f32 0.0078125, %v2416_v18  ;;  %v2784_v61 = vsel %vm787_vm1, %v2783_v22, %v2779_v37 }
 0x430   : > { %v2496_v44 = vmul.f32 0.0078125, %v2412_v17 }
 0x431   : > { %v2797_v53 = vrot.slane %v2498_v24, %v5271_v8 }
 0x432   : > { %v2418_v57 = vpop.xlane.xlu0 %2417  ;;  %v2788_v48 = vrot.slane %v2496_v44, %v5273_v62 }
 0x433   : > { %v2422_v16 = vpop.xlane.xlu1 %2421  ;;  %v2499_v29 = vmul.f32 0.0078125, %v2418_v57  ;;  %v2798_v18 = vsel %vm780_vm0, %v2797_v53, %v2793_v30 }
 0x434   : > { %v2501_v55 = vmul.f32 0.0078125, %v2422_v16 }
 0x435   : > { %v2802_v46 = vrot.slane %v2499_v29, %v5272_v14 }
 0x436   : > { %v2424_v51 = vpop.xlane.xlu0 %2423  ;;  %v2812_v57 = vrot.slane %v2501_v55, %v5270_v15 }
 0x437   : > { %v2420_v38 = vpop.xlane.xlu1 %2419 }
 0x438   : > { %v2500_v21 = vmul.f32 0.0078125, %v2420_v38 }
 0x43a   : > { %v2426_v52 = vpop.xlane.xlu0 %2425  ;;  %v2807_v58 = vrot.slane %v2500_v21, %v5273_v62 }
 0x43b   : > { %v2430_v31 = vpop.xlane.xlu1 %2429  ;;  %v2503_v43 = vmul.f32 0.0078125, %v2426_v52 }
 0x43c   : > { %v2505_v7 = vmul.f32 0.0078125, %v2430_v31 }
 0x43d   : > { %v2821_v50 = vrot.slane %v2503_v43, %v5272_v14 }
 0x43e   : > { %v2432_v59 = vpop.xlane.xlu0 %2431 }
 0x43f   : > { %v2370_v5 = vpop.xlane.xlu1 %2369  ;;  %v2506_v47 = vmul.f32 0.0078125, %v2432_v59 }
 0x440   : > { %v2475_v23 = vmul.f32 0.0078125, %v2370_v5 }
 0x441   : > { %v2835_v16 = vrot.slane %v2506_v47, %v5271_v8 }
 0x442   : > { %v2374_v20 = vpop.xlane.xlu0 %2373  ;;  %v2688_v54 = vrot.slane %v2475_v23, %v5272_v14 }
 0x443   : > { %v2376_v19 = vpop.xlane.xlu1 %2375  ;;  %v2477_v3 = vmul.f32 0.0078125, %v2374_v20  ;;  %v2831_v20 = vrot.slane %v2505_v7, %v5270_v15 }
 0x444   : > { %v2689_v41 = vsel %vm787_vm1, %v2688_v54, %v2684_v27  ;;  %v2502_v27 = vmul.f32 0.0078125, %v2424_v51  ;;  %v2478_v49 = vmul.f32 0.0078125, %v2376_v19  ;;  %v2803_v51 = vsel %vm787_vm1, %v2802_v46, %v2798_v18 }
 0x445   : > { %v2698_v38 = vrot.slane %v2477_v3, %v5270_v15  ;;  %v2808_v5 = vsel %vm794_vm2, %v2807_v58, %v2803_v51 }
 0x446   : > { %v2428_v6 = vpop.xlane.xlu0 %2427  ;;  %v2816_v0 = vrot.slane %v2502_v27, %v5271_v8  ;;  %v2702_v52 = vrot.slane %v2478_v49, %v5271_v8 }
 0x447   : > { %v2434_v1 = vpop.xlane.xlu1 %2433  ;;  %v2504_v59 = vmul.f32 0.0078125, %v2428_v6 }
 0x448   : > { %v2817_v31 = vsel %vm780_vm0, %v2816_v0, %v2812_v57  ;;  %v2507_v19 = vmul.f32 0.0078125, %v2434_v1 }
 0x44a   : > { %v2438_v33 = vpop.xlane.xlu0 %2437  ;;  %v2840_v1 = vrot.slane %v2507_v19, %v5272_v14 }
 0x44b   : > { %v2440_v60 = vpop.xlane.xlu1 %2439  ;;  %v2509_v54 = vmul.f32 0.0078125, %v2438_v33 }
 0x44e   : > { %v2372_v11 = vpop.xlane.xlu0 %2371 }
 0x44f   : > { %v2476_v34 = vmul.f32 0.0078125, %v2372_v11  ;;  %v2378_v45 = vpop.xlane.xlu1 %2377  ;;  %v2510_v11 = vmul.f32 0.0078125, %v2440_v60 }
 0x450   : > { %v2479_v35 = vmul.f32 0.0078125, %v2378_v45  ;;  %v2850_v45 = vrot.slane %v2509_v54, %v5270_v15 }
 0x451   : > { %v2693_v25 = vrot.slane %v2476_v34, %v5273_v62  ;;  %v2836_v34 = vsel %vm780_vm0, %v2835_v16, %v2831_v20  ;;  %v2854_v24 = vrot.slane %v2510_v11, %v5271_v8 }
 0x452   : > { %v2382_v39 = vpop.xlane.xlu0 %2381 }
 0x453   : > { %v2694_v63 = vsel %vm794_vm2, %v2693_v25, %v2689_v41  ;;  %v2384_v4 = vpop.xlane.xlu1 %2383  ;;  %v2703_v25 = vsel %vm780_vm0, %v2702_v52, %v2698_v38  ;;  %v2826_v41 = vrot.slane %v2504_v59, %v5273_v62  ;;  %v2481_v10 = vmul.f32 0.0078125, %v2382_v39 }
 0x454   : > { %v4849_v36 = vsel %vm1089_vm7, %v2694_v63, %v4820_v32  ;;  %v2789_v32 = vsel %vm794_vm2, %v2788_v48, %v2784_v61  ;;  %v2482_v9 = vmul.f32 0.0078125, %v2384_v4  ;;  %v2707_v48 = vrot.slane %v2479_v35, %v5272_v14 }
 0x455   : > { %v2893_v17 = vsel %vm1083_vm4, %v2789_v32, %v2892_v56  ;;  %v2822_v56 = vsel %vm787_vm1, %v2821_v50, %v2817_v31  ;;  %v2717_v37 = vrot.slane %v2481_v10, %v5270_v15  ;;  %v2841_v61 = vsel %vm787_vm1, %v2840_v1, %v2836_v34 }
 0x456   : > { %v2436_v28 = vpop.xlane.xlu0 %2435  ;;  %v2721_v43 = vrot.slane %v2482_v9, %v5271_v8  ;;  %v2855_v46 = vsel %vm780_vm0, %v2854_v24, %v2850_v45  ;;  %v2708_v3 = vsel %vm787_vm1, %v2707_v48, %v2703_v25 }
 0x457   : > { %v2442_v13 = vpop.xlane.xlu1 %2441  ;;  %v2508_v26 = vmul.f32 0.0078125, %v2436_v28  ;;  %v2827_v28 = vsel %vm794_vm2, %v2826_v41, %v2822_v56 }
 0x458   : > { %v2511_v44 = vmul.f32 0.0078125, %v2442_v13  ;;  %v2722_v50 = vsel %vm780_vm0, %v2721_v43, %v2717_v37 }
 0x459   : > { %v2845_v27 = vrot.slane %v2508_v26, %v5273_v62 }
 0x45a   : > { %v2446_v40 = vpop.xlane.xlu0 %2445  ;;  %v2859_v39 = vrot.slane %v2511_v44, %v5272_v14 }
 0x45b   : > { %v2448_v2 = vpop.xlane.xlu1 %2447  ;;  %v2513_v63 = vmul.f32 0.0078125, %v2446_v40  ;;  %v2846_v58 = vsel %vm794_vm2, %v2845_v27, %v2841_v61 }
 0x45c   : > { %v2514_v22 = vmul.f32 0.0078125, %v2448_v2  ;;  %v2860_v7 = vsel %vm787_vm1, %v2859_v39, %v2855_v46 }
 0x45d   : > { %v2869_v53 = vrot.slane %v2513_v63, %v5270_v15 }
 0x45e   : > { %v2380_v23 = vpop.xlane.xlu0 %2379  ;;  %v2873_v55 = vrot.slane %v2514_v22, %v5271_v8  ;;  %v2894_v8 = vsel %vm1085_vm5, %v2808_v5, %v2893_v17 }
 0x45f   : > { %v2386_v42 = vpop.xlane.xlu1 %2385  ;;  %v2480_v6 = vmul.f32 0.0078125, %v2380_v23  ;;  %v2895_v18 = vsel %vm1087_vm6, %v2827_v28, %v2894_v8 }
 0x460   : > { %v2483_v33 = vmul.f32 0.0078125, %v2386_v42  ;;  %v2874_v57 = vsel %vm780_vm0, %v2873_v55, %v2869_v53  ;;  %v2896_v38 = vsel %vm1089_vm7, %v2846_v58, %v2895_v18 }
 0x461   : > { %v2712_v4 = vrot.slane %v2480_v6, %v5273_v62 }
 0x462   : > { %v2444_v60 = vpop.xlane.xlu0 %2443  ;;  %v2726_v47 = vrot.slane %v2483_v33, %v5272_v14 }
 0x463   : > { %v2512_v29 = vmul.f32 0.0078125, %v2444_v60  ;;  %v2450_v12 = vpop.xlane.xlu1 %2449  ;;  %v2713_v40 = vsel %vm794_vm2, %v2712_v4, %v2708_v3 }
 0x464   : > { %v2515_v21 = vmul.f32 0.0078125, %v2450_v12  ;;  %v2727_v16 = vsel %vm787_vm1, %v2726_v47, %v2722_v50  ;;  %v2890_v17 = vsel %vm1091_vm8, %v2713_v40, %v4849_v36 }
 0x465   : > { %v2864_v13 = vrot.slane %v2512_v29, %v5273_v62 }
 0x466   : > { %v2388_v32 = vpop.xlane.xlu0 %2387  ;;  %v2878_v49 = vrot.slane %v2515_v21, %v5272_v14 }
 0x467   : > { %v2484_v30 = vmul.f32 0.0078125, %v2388_v32  ;;  %v2452_v0 = vpop.xlane.xlu1 %2451  ;;  %v2865_v2 = vsel %vm794_vm2, %v2864_v13, %v2860_v7 }
 0x468   : > { %v2516_v15 = vmul.f32 0.0078125, %v2452_v0  ;;  %v2879_v52 = vsel %vm787_vm1, %v2878_v49, %v2874_v57 }
 0x469   : > { %v2731_v14 = vrot.slane %v2484_v30, %v5273_v62 }
 0x46a   : > { %v2883_v51 = vrot.slane %v2516_v15, %v5273_v62  ;;  %v2897_v62 = vsel %vm1091_vm8, %v2865_v2, %v2896_v38 }
 0x46b   : > { %v2732_v59 = vsel %vm794_vm2, %v2731_v14, %v2727_v16 }
 0x46c   : > { %v2891_v31 = vsel %vm1093_vm9, %v2732_v59, %v2890_v17  ;;  %v2884_v36 = vsel %vm794_vm2, %v2883_v51, %v2879_v52 }
 0x46d   : > { %2901 = vst.msk [vmem:[%s252_s24] sm:$0xff] %vm1104_vm10, %v2891_v31  ;;  %v2898_v5 = vsel %vm1093_vm9, %v2884_v36, %v2897_v62 }
 0x46e   : > { %2902 = vst.msk [vmem:[%s252_s24 + $0x8] sm:$0xff] %vm1104_vm10, %v2898_v5 }
 0x46f   : > { %3395 = shalt.err (!%p3392_p3)
}
 0x470   : > { %s3396_s27 = scalar_lea.hbm %s4914_s21, 256  ;;  %s3400_s4 = scalar_lea.hbm %s4972_s3, 2048 }
 0x471   : > { %p3397_p0 = scmp.ne.s32.totalorder %s4914_s21, %s3396_s27  ;;  %p3401_p6 = scmp.lt.s32.totalorder %s4914_s21, %s4972_s3 }
 0x472   : > { %p3402_p11 = scmp.lt.s32.totalorder %s3400_s4, %s3396_s27 }
 0x473   : > { %p3398_p1 = pnand %p3397_p0, %p3592_p7 }
 0x474   : > { %p3403_p5 = por %p3402_p11, %p3401_p6 }
 0x475   : > { %p3399_p4 = pneg %p3398_p1 }
 0x477   : > { %p3404_p8 = pnand %p3403_p5, %p3399_p4 }
 0x479   : > { %3407 = shalt.err (!%p3404_p8)
}
 0x47a   : > { %s3476_s22 = smov 128   ;;  %s3477_s24 = smov 8  }
 0x47b   : > { %3219 = dma.vmem_to_hbm [thread:$0]  (%p3592_p7), %s4916_s5, 256, %s4914_s21, %s2904_s8, %s3476_s22, %s3476_s22, %s3477_s24  }
 0x47c PF: > { %p3241_p9 = scmp.ge.s32.totalorder %s3466_s17, 2  ;;  %s2934_s15 = sand.u32 1, %s3446_s12  }
 0x47d   : > { %p5274_p10 = scmp.ne.s32.totalorder %s5052_s23, 0  ;;  %s2935_s7 = scalar_lea.sflag [#allocation4], %s2934_s15 }
 0x47f   : > { %p3233_p2 = pnand %p3241_p9, %p5274_p10 }
 0x481   : > { %p3234_p12 = pneg %p3233_p2 }
 0x483   : > { %3441 = dma.done.wait (%p3234_p12), %s2935_s7, 256  }
 0x484   : > { %3443 = vsyncadd (%p3234_p12), %s2935_s7, 4294967040  ;;  %s20_s17 = sadd.s32 1, %s3466_s17   ;;  %s5275_s12 = smov %s3450_s13 }
 0x485   : > { %p17_p13 = scmp.ge.s32.totalorder %s20_s17, 10   ;;  %s5276_s13 = smov %s3454_s14 }
 0x486   : > { %s5277_s14 = smov %s3601_s29  ;;  %s5278_s15 = smov %s3462_s16 }
 0x487   : > { %s5279_s16 = smov %s5281_s11  ;;  %19 = sbr.rel (!%p17_p13) target bundleno = 7 (0x7), region = 87 }
 0x48c   :  { %2940 = vsyncpa [#allocation3], 1 }
 0x48d   :  { %2942 = vsyncpa [#allocation3 + $0x1], 1 }
 0x48e   :  { %2943 = vsyncpa [#allocation6], 1 }
 0x48f   :  { %2944 = vsyncpa [#allocation4], 1 }
 0x490   :  { %2946 = vsyncpa [#allocation4 + $0x1], 1 }

</bundles_post_ra>
